<compile_context>
chip_gen: v7x
topology: tpu7x:2x2x1
jax: 0.10.0
libtpu: 0.0.40
codegen_flags: <defaults>
</compile_context>

<pallas_src>
import jax
import jax.numpy as jnp
from jax.experimental import pallas as pl
from jax.experimental.pallas import tpu as pltpu


def _vmem_capacity_bytes():
    try:
        return int(pltpu.get_tpu_info().vmem_capacity_bytes)
    except Exception:
        return 64 * 1024 * 1024  # conservative default (v7x per-TensorCore)


def _choose_channel_block(N, C, H, W, Ho, Wo, p, in_isz, out_isz):
    """Channel block Cb (a divisor of C), sized from a generation-aware VMEM budget."""
    Hp, Wp = H + 2 * p, W + 2 * p
    per_c = (2 * H * W * in_isz          # double-buffered input block
             + 2 * Ho * Wo * out_isz     # double-buffered output block
             + Hp * Wp * 4)              # f32 halo scratch
    # ~21 MiB working set on 128 MiB VMEM parts (v5e/v6e), ~10 MiB on v7x.
    budget = max(2 * 1024 * 1024, _vmem_capacity_bytes() // 6)
    cap = max(1, min(int(budget // per_c), 128))
    cb = 1
    for d in range(1, min(C, cap) + 1):
        if C % d == 0:
            cb = d
    # Keep >= 2 parallel grid steps when possible so v7x's 2 TCs both work.
    if N * (C // cb) < 2 and cb > 1:
        for d in range(cb - 1, 0, -1):
            if C % d == 0 and C // d >= 2:
                cb = d
                break
    return cb, per_c


def _make_kernel(K, p, H, W, Ho, Wo, Cb, out_dtype):
    """Kernel closure over static kernel-size / spatial / channel-block dims."""
    Hp, Wp = H + 2 * p, W + 2 * p
    KK = K * K

    def kernel(w_ref, b_ref, x_ref, o_ref, xpad_ref):
        # w_ref   : SMEM (C*K*K,) f32   flat taps, index c*K*K + kh*K + kw
        # b_ref   : SMEM (C,)     f32
        # x_ref   : VMEM (Cb, H, W)     input tile (batch dim squeezed)
        # o_ref   : VMEM (Cb, Ho, Wo)   output tile
        # xpad_ref: VMEM (Cb, Hp, Wp) f32 halo scratch
        cg = pl.program_id(0)

        # Zero only the 1-pixel halo ring; the interior is overwritten below.
        if p > 0:
            xpad_ref[:, :p, :] = jnp.zeros((Cb, p, Wp), jnp.float32)
            xpad_ref[:, p + H:, :] = jnp.zeros((Cb, Hp - p - H, Wp), jnp.float32)
            xpad_ref[:, :, :p] = jnp.zeros((Cb, Hp, p), jnp.float32)
            xpad_ref[:, :, p + W:] = jnp.zeros((Cb, Hp, Wp - p - W), jnp.float32)
        # Interior copy; cast to f32 accumulation precision (bf16 inputs OK).
        xpad_ref[:, p:p + H, p:p + W] = x_ref[...].astype(jnp.float32)

        c0 = cg * Cb

        def channel_body(c, carry):
            ch = c0 + c
            wbase = ch * KK
            acc = jnp.full((Ho, Wo), b_ref[ch], dtype=jnp.float32)
            for kh in range(K):
                for kw in range(K):
                    w = w_ref[wbase + kh * K + kw]                 # SMEM scalar
                    acc = acc + w * xpad_ref[c, kh:kh + Ho, kw:kw + Wo]
            o_ref[c] = acc.astype(out_dtype)
            return carry

        if Cb <= 8:
            for c in range(Cb):            # small blocks: static unroll
                channel_body(c, None)
        else:
            jax.lax.fori_loop(0, Cb, channel_body, None)

    return kernel


def depthwise_conv(x, weight, bias, *, kernel_size=3, stride=1, padding=1):
    """x: (N, C, H, W); weight: (C, 1, K, K); bias: (C,).  NCHW in and out."""
    assert stride == 1, "this kernel implements the module's default stride=1"
    N, C, H, W = x.shape
    K, p = kernel_size, padding
    Ho, Wo = H + 2 * p - K + 1, W + 2 * p - K + 1

    in_isz = jnp.dtype(x.dtype).itemsize
    out_isz = in_isz
    Cb, per_c = _choose_channel_block(N, C, H, W, Ho, Wo, p, in_isz, out_isz)
    n_cg = C // Cb

    # Flat scalar tables for SMEM (1-D to avoid 2-D SMEM padding blowup).
    w_flat = weight.reshape(C * K * K).astype(jnp.float32)
    b_flat = bias.reshape(C).astype(jnp.float32)

    kernel = _make_kernel(K, p, H, W, Ho, Wo, Cb, x.dtype)

    vmem_cap = _vmem_capacity_bytes()
    needed = Cb * per_c
    vmem_limit = int(min(int(0.9 * vmem_cap),
                         max(2 * needed + (4 << 20), 32 << 20)))

    cost = pl.CostEstimate(
        flops=2 * K * K * N * C * Ho * Wo,
        transcendentals=0,
        bytes_accessed=(N * C * H * W * in_isz + N * C * Ho * Wo * out_isz
                        + (w_flat.size + b_flat.size) * 4),
    )

    out = pl.pallas_call(
        kernel,
        out_shape=jax.ShapeDtypeStruct((N, C, Ho, Wo), x.dtype),
        grid_spec=pltpu.PrefetchScalarGridSpec(
            num_scalar_prefetch=0,
            # Channel-group outer, batch inner: the per-step input DMA walks
            # contiguous NCHW chunks and the SMEM weight tables stay resident.
            grid=(n_cg, N),
            in_specs=[
                pl.BlockSpec(memory_space=pltpu.MemorySpace.SMEM),   # weights
                pl.BlockSpec(memory_space=pltpu.MemorySpace.SMEM),   # bias
                pl.BlockSpec((None, Cb, H, W), lambda cg, n: (n, cg, 0, 0)),
            ],
            out_specs=pl.BlockSpec((None, Cb, Ho, Wo),
                                   lambda cg, n: (n, cg, 0, 0)),
            scratch_shapes=[
                pltpu.VMEM((Cb, H + 2 * p, W + 2 * p), jnp.float32),
            ],
        ),
        compiler_params=pltpu.CompilerParams(
            dimension_semantics=("parallel", "parallel"),
            vmem_limit_bytes=vmem_limit,
        ),
        cost_estimate=cost,
    )(w_flat, b_flat, x)

    return out


def depthwise_conv_ref(x, weight, bias, *, padding=1):
    """Reference via lax.conv_general_dilated (NCHW, depthwise)."""
    C = x.shape[1]
    y = jax.lax.conv_general_dilated(
        x,
        weight,  # (C, 1, K, K)
        window_strides=(1, 1),
        padding=((padding, padding), (padding, padding)),
        dimension_numbers=("NCHW", "OIHW", "NCHW"),
        feature_group_count=C,
    )
    return y + bias[None, :, None, None]


if __name__ == "__main__":
    key = jax.random.PRNGKey(0)
    k_x, k_w, k_b = jax.random.split(key, 3)

    N, C, H, W = 2, 4, 16, 16
    K = 3

    x = jax.random.normal(k_x, (N, C, H, W), dtype=jnp.float32)
    # nn.Conv2d(groups=C) weight shape: (C, 1, K, K); bias: (C,)
    weight = jax.random.normal(k_w, (C, 1, K, K), dtype=jnp.float32) * 0.1
    bias = jax.random.normal(k_b, (C,), dtype=jnp.float32) * 0.1

    out = depthwise_conv(x, weight, bias, kernel_size=K, stride=1, padding=1)
    out = jax.block_until_ready(out)

    ref = depthwise_conv_ref(x, weight, bias, padding=1)
    assert out.shape == ref.shape == (N, C, H, W)
    assert jnp.allclose(out, ref, atol=1e-5, rtol=1e-5), "mismatch vs lax reference"

    print("KERNEL_OK")
</pallas_src>

<mosaic_0001>
module attributes {stable_mosaic.version = 11 : i64} {
  func.func @kernel(%arg0: i32, %arg1: i32, %arg2: memref<36xf32, #tpu.memory_space<smem>>, %arg3: memref<4xf32, #tpu.memory_space<smem>>, %arg4: memref<1x4x16x16xf32, #tpu.memory_space<vmem>>, %arg5: memref<1x4x16x16xf32, #tpu.memory_space<vmem>>, %arg6: memref<4x18x18xf32, #tpu.memory_space<vmem>>) attributes {dimension_semantics = [#tpu.dimension_semantics<parallel>, #tpu.dimension_semantics<parallel>], iteration_bounds = array<i64: 1, 2>, scalar_prefetch = 0 : i64, scratch_operands = 1 : i64, tpu.core_type = #tpu.core_type<tc>, window_params = [{transform_indices = @transform_0, window_bounds = array<i64: 36>}, {transform_indices = @transform_1, window_bounds = array<i64: 4>}, {transform_indices = @transform_2, window_bounds = array<i64: 1, 4, 16, 16>}, {transform_indices = @transform_3, window_bounds = array<i64: 1, 4, 16, 16>}]} {
    %cst = arith.constant 0.000000e+00 : f32
    %0 = vector.broadcast %cst : f32 to vector<4x1x18xf32>
    %c0 = arith.constant 0 : index
    %c0_0 = arith.constant 0 : index
    %c0_1 = arith.constant 0 : index
    %1 = vector.load %arg6[%c0, %c0_0, %c0_1] : memref<4x18x18xf32, #tpu.memory_space<vmem>>, vector<4x1x18xf32>
    tpu.vector_store %arg6[%c0, %c0_0, %c0_1], %0 {strides = array<i32>} : memref<4x18x18xf32, #tpu.memory_space<vmem>>, vector<4x1x18xf32>,
    %cst_2 = arith.constant 0.000000e+00 : f32
    %2 = vector.broadcast %cst_2 : f32 to vector<4x1x18xf32>
    %c0_3 = arith.constant 0 : index
    %c17 = arith.constant 17 : index
    %c0_4 = arith.constant 0 : index
    %3 = vector.load %arg6[%c0_3, %c17, %c0_4] : memref<4x18x18xf32, #tpu.memory_space<vmem>>, vector<4x1x18xf32>
    tpu.vector_store %arg6[%c0_3, %c17, %c0_4], %2 {strides = array<i32>} : memref<4x18x18xf32, #tpu.memory_space<vmem>>, vector<4x1x18xf32>,
    %cst_5 = arith.constant 0.000000e+00 : f32
    %4 = vector.broadcast %cst_5 : f32 to vector<4x18x1xf32>
    %c0_6 = arith.constant 0 : index
    %c0_7 = arith.constant 0 : index
    %c0_8 = arith.constant 0 : index
    %5 = vector.load %arg6[%c0_6, %c0_7, %c0_8] : memref<4x18x18xf32, #tpu.memory_space<vmem>>, vector<4x18x1xf32>
    tpu.vector_store %arg6[%c0_6, %c0_7, %c0_8], %4 {strides = array<i32>} : memref<4x18x18xf32, #tpu.memory_space<vmem>>, vector<4x18x1xf32>,
    %cst_9 = arith.constant 0.000000e+00 : f32
    %6 = vector.broadcast %cst_9 : f32 to vector<4x18x1xf32>
    %c0_10 = arith.constant 0 : index
    %c0_11 = arith.constant 0 : index
    %c17_12 = arith.constant 17 : index
    %7 = vector.load %arg6[%c0_10, %c0_11, %c17_12] : memref<4x18x18xf32, #tpu.memory_space<vmem>>, vector<4x18x1xf32>
    tpu.vector_store %arg6[%c0_10, %c0_11, %c17_12], %6 {strides = array<i32>} : memref<4x18x18xf32, #tpu.memory_space<vmem>>, vector<4x18x1xf32>,
    %c0_13 = arith.constant 0 : index
    %c0_14 = arith.constant 0 : index
    %c0_15 = arith.constant 0 : index
    %c0_16 = arith.constant 0 : index
    %8 = vector.load %arg4[%c0_13, %c0_14, %c0_15, %c0_16] : memref<1x4x16x16xf32, #tpu.memory_space<vmem>>, vector<1x4x16x16xf32>
    %9 = vector.shape_cast %8 : vector<1x4x16x16xf32> to vector<4x16x16xf32>
    %c0_17 = arith.constant 0 : index
    %c1 = arith.constant 1 : index
    %c1_18 = arith.constant 1 : index
    %10 = vector.load %arg6[%c0_17, %c1, %c1_18] : memref<4x18x18xf32, #tpu.memory_space<vmem>>, vector<4x16x16xf32>
    tpu.vector_store %arg6[%c0_17, %c1, %c1_18], %9 {strides = array<i32>} : memref<4x18x18xf32, #tpu.memory_space<vmem>>, vector<4x16x16xf32>,
    %c4_i32 = arith.constant 4 : i32
    %11 = arith.muli %arg0, %c4_i32 : i32
    %c0_i32 = arith.constant 0 : i32
    %12 = arith.addi %11, %c0_i32 : i32
    %c9_i32 = arith.constant 9 : i32
    %13 = arith.muli %12, %c9_i32 : i32
    %14 = arith.index_cast %12 : i32 to index
    %15 = memref.load %arg3[%14] : memref<4xf32, #tpu.memory_space<smem>>
    %16 = vector.broadcast %15 : f32 to vector<16x16xf32>
    %c0_i32_19 = arith.constant 0 : i32
    %17 = arith.addi %13, %c0_i32_19 : i32
    %c0_i32_20 = arith.constant 0 : i32
    %18 = arith.addi %17, %c0_i32_20 : i32
    %19 = arith.index_cast %18 : i32 to index
    %20 = memref.load %arg2[%19] : memref<36xf32, #tpu.memory_space<smem>>
    %c0_21 = arith.constant 0 : index
    %c0_22 = arith.constant 0 : index
    %c0_23 = arith.constant 0 : index
    %21 = vector.load %arg6[%c0_21, %c0_22, %c0_23] : memref<4x18x18xf32, #tpu.memory_space<vmem>>, vector<1x16x16xf32>
    %22 = vector.shape_cast %21 : vector<1x16x16xf32> to vector<16x16xf32>
    %23 = vector.broadcast %20 : f32 to vector<16x16xf32>
    %24 = arith.mulf %23, %22 : vector<16x16xf32>
    %25 = arith.addf %16, %24 : vector<16x16xf32>
    %c0_i32_24 = arith.constant 0 : i32
    %26 = arith.addi %13, %c0_i32_24 : i32
    %c1_i32 = arith.constant 1 : i32
    %27 = arith.addi %26, %c1_i32 : i32
    %28 = arith.index_cast %27 : i32 to index
    %29 = memref.load %arg2[%28] : memref<36xf32, #tpu.memory_space<smem>>
    %c0_25 = arith.constant 0 : index
    %c0_26 = arith.constant 0 : index
    %c1_27 = arith.constant 1 : index
    %30 = vector.load %arg6[%c0_25, %c0_26, %c1_27] : memref<4x18x18xf32, #tpu.memory_space<vmem>>, vector<1x16x16xf32>
    %31 = vector.shape_cast %30 : vector<1x16x16xf32> to vector<16x16xf32>
    %32 = vector.broadcast %29 : f32 to vector<16x16xf32>
    %33 = arith.mulf %32, %31 : vector<16x16xf32>
    %34 = arith.addf %25, %33 : vector<16x16xf32>
    %c0_i32_28 = arith.constant 0 : i32
    %35 = arith.addi %13, %c0_i32_28 : i32
    %c2_i32 = arith.constant 2 : i32
    %36 = arith.addi %35, %c2_i32 : i32
    %37 = arith.index_cast %36 : i32 to index
    %38 = memref.load %arg2[%37] : memref<36xf32, #tpu.memory_space<smem>>
    %c0_29 = arith.constant 0 : index
    %c0_30 = arith.constant 0 : index
    %c2 = arith.constant 2 : index
    %39 = vector.load %arg6[%c0_29, %c0_30, %c2] : memref<4x18x18xf32, #tpu.memory_space<vmem>>, vector<1x16x16xf32>
    %40 = vector.shape_cast %39 : vector<1x16x16xf32> to vector<16x16xf32>
    %41 = vector.broadcast %38 : f32 to vector<16x16xf32>
    %42 = arith.mulf %41, %40 : vector<16x16xf32>
    %43 = arith.addf %34, %42 : vector<16x16xf32>
    %c3_i32 = arith.constant 3 : i32
    %44 = arith.addi %13, %c3_i32 : i32
    %c0_i32_31 = arith.constant 0 : i32
    %45 = arith.addi %44, %c0_i32_31 : i32
    %46 = arith.index_cast %45 : i32 to index
    %47 = memref.load %arg2[%46] : memref<36xf32, #tpu.memory_space<smem>>
    %c0_32 = arith.constant 0 : index
    %c1_33 = arith.constant 1 : index
    %c0_34 = arith.constant 0 : index
    %48 = vector.load %arg6[%c0_32, %c1_33, %c0_34] : memref<4x18x18xf32, #tpu.memory_space<vmem>>, vector<1x16x16xf32>
    %49 = vector.shape_cast %48 : vector<1x16x16xf32> to vector<16x16xf32>
    %50 = vector.broadcast %47 : f32 to vector<16x16xf32>
    %51 = arith.mulf %50, %49 : vector<16x16xf32>
    %52 = arith.addf %43, %51 : vector<16x16xf32>
    %c3_i32_35 = arith.constant 3 : i32
    %53 = arith.addi %13, %c3_i32_35 : i32
    %c1_i32_36 = arith.constant 1 : i32
    %54 = arith.addi %53, %c1_i32_36 : i32
    %55 = arith.index_cast %54 : i32 to index
    %56 = memref.load %arg2[%55] : memref<36xf32, #tpu.memory_space<smem>>
    %c0_37 = arith.constant 0 : index
    %c1_38 = arith.constant 1 : index
    %c1_39 = arith.constant 1 : index
    %57 = vector.load %arg6[%c0_37, %c1_38, %c1_39] : memref<4x18x18xf32, #tpu.memory_space<vmem>>, vector<1x16x16xf32>
    %58 = vector.shape_cast %57 : vector<1x16x16xf32> to vector<16x16xf32>
    %59 = vector.broadcast %56 : f32 to vector<16x16xf32>
    %60 = arith.mulf %59, %58 : vector<16x16xf32>
    %61 = arith.addf %52, %60 : vector<16x16xf32>
    %c3_i32_40 = arith.constant 3 : i32
    %62 = arith.addi %13, %c3_i32_40 : i32
    %c2_i32_41 = arith.constant 2 : i32
    %63 = arith.addi %62, %c2_i32_41 : i32
    %64 = arith.index_cast %63 : i32 to index
    %65 = memref.load %arg2[%64] : memref<36xf32, #tpu.memory_space<smem>>
    %c0_42 = arith.constant 0 : index
    %c1_43 = arith.constant 1 : index
    %c2_44 = arith.constant 2 : index
    %66 = vector.load %arg6[%c0_42, %c1_43, %c2_44] : memref<4x18x18xf32, #tpu.memory_space<vmem>>, vector<1x16x16xf32>
    %67 = vector.shape_cast %66 : vector<1x16x16xf32> to vector<16x16xf32>
    %68 = vector.broadcast %65 : f32 to vector<16x16xf32>
    %69 = arith.mulf %68, %67 : vector<16x16xf32>
    %70 = arith.addf %61, %69 : vector<16x16xf32>
    %c6_i32 = arith.constant 6 : i32
    %71 = arith.addi %13, %c6_i32 : i32
    %c0_i32_45 = arith.constant 0 : i32
    %72 = arith.addi %71, %c0_i32_45 : i32
    %73 = arith.index_cast %72 : i32 to index
    %74 = memref.load %arg2[%73] : memref<36xf32, #tpu.memory_space<smem>>
    %c0_46 = arith.constant 0 : index
    %c2_47 = arith.constant 2 : index
    %c0_48 = arith.constant 0 : index
    %75 = vector.load %arg6[%c0_46, %c2_47, %c0_48] : memref<4x18x18xf32, #tpu.memory_space<vmem>>, vector<1x16x16xf32>
    %76 = vector.shape_cast %75 : vector<1x16x16xf32> to vector<16x16xf32>
    %77 = vector.broadcast %74 : f32 to vector<16x16xf32>
    %78 = arith.mulf %77, %76 : vector<16x16xf32>
    %79 = arith.addf %70, %78 : vector<16x16xf32>
    %c6_i32_49 = arith.constant 6 : i32
    %80 = arith.addi %13, %c6_i32_49 : i32
    %c1_i32_50 = arith.constant 1 : i32
    %81 = arith.addi %80, %c1_i32_50 : i32
    %82 = arith.index_cast %81 : i32 to index
    %83 = memref.load %arg2[%82] : memref<36xf32, #tpu.memory_space<smem>>
    %c0_51 = arith.constant 0 : index
    %c2_52 = arith.constant 2 : index
    %c1_53 = arith.constant 1 : index
    %84 = vector.load %arg6[%c0_51, %c2_52, %c1_53] : memref<4x18x18xf32, #tpu.memory_space<vmem>>, vector<1x16x16xf32>
    %85 = vector.shape_cast %84 : vector<1x16x16xf32> to vector<16x16xf32>
    %86 = vector.broadcast %83 : f32 to vector<16x16xf32>
    %87 = arith.mulf %86, %85 : vector<16x16xf32>
    %88 = arith.addf %79, %87 : vector<16x16xf32>
    %c6_i32_54 = arith.constant 6 : i32
    %89 = arith.addi %13, %c6_i32_54 : i32
    %c2_i32_55 = arith.constant 2 : i32
    %90 = arith.addi %89, %c2_i32_55 : i32
    %91 = arith.index_cast %90 : i32 to index
    %92 = memref.load %arg2[%91] : memref<36xf32, #tpu.memory_space<smem>>
    %c0_56 = arith.constant 0 : index
    %c2_57 = arith.constant 2 : index
    %c2_58 = arith.constant 2 : index
    %93 = vector.load %arg6[%c0_56, %c2_57, %c2_58] : memref<4x18x18xf32, #tpu.memory_space<vmem>>, vector<1x16x16xf32>
    %94 = vector.shape_cast %93 : vector<1x16x16xf32> to vector<16x16xf32>
    %95 = vector.broadcast %92 : f32 to vector<16x16xf32>
    %96 = arith.mulf %95, %94 : vector<16x16xf32>
    %97 = arith.addf %88, %96 : vector<16x16xf32>
    %c0_59 = arith.constant 0 : index
    %c0_60 = arith.constant 0 : index
    %c0_61 = arith.constant 0 : index
    %c0_62 = arith.constant 0 : index
    %98 = vector.load %arg5[%c0_59, %c0_60, %c0_61, %c0_62] : memref<1x4x16x16xf32, #tpu.memory_space<vmem>>, vector<1x1x16x16xf32>
    %99 = vector.shape_cast %98 : vector<1x1x16x16xf32> to vector<16x16xf32>
    %100 = vector.shape_cast %97 : vector<16x16xf32> to vector<1x1x16x16xf32>
    tpu.vector_store %arg5[%c0_59, %c0_60, %c0_61, %c0_62], %100 {strides = array<i32>} : memref<1x4x16x16xf32, #tpu.memory_space<vmem>>, vector<1x1x16x16xf32>,
    %c1_i32_63 = arith.constant 1 : i32
    %101 = arith.addi %11, %c1_i32_63 : i32
    %c9_i32_64 = arith.constant 9 : i32
    %102 = arith.muli %101, %c9_i32_64 : i32
    %103 = arith.index_cast %101 : i32 to index
    %104 = memref.load %arg3[%103] : memref<4xf32, #tpu.memory_space<smem>>
    %105 = vector.broadcast %104 : f32 to vector<16x16xf32>
    %c0_i32_65 = arith.constant 0 : i32
    %106 = arith.addi %102, %c0_i32_65 : i32
    %c0_i32_66 = arith.constant 0 : i32
    %107 = arith.addi %106, %c0_i32_66 : i32
    %108 = arith.index_cast %107 : i32 to index
    %109 = memref.load %arg2[%108] : memref<36xf32, #tpu.memory_space<smem>>
    %c1_67 = arith.constant 1 : index
    %c0_68 = arith.constant 0 : index
    %c0_69 = arith.constant 0 : index
    %110 = vector.load %arg6[%c1_67, %c0_68, %c0_69] : memref<4x18x18xf32, #tpu.memory_space<vmem>>, vector<1x16x16xf32>
    %111 = vector.shape_cast %110 : vector<1x16x16xf32> to vector<16x16xf32>
    %112 = vector.broadcast %109 : f32 to vector<16x16xf32>
    %113 = arith.mulf %112, %111 : vector<16x16xf32>
    %114 = arith.addf %105, %113 : vector<16x16xf32>
    %c0_i32_70 = arith.constant 0 : i32
    %115 = arith.addi %102, %c0_i32_70 : i32
    %c1_i32_71 = arith.constant 1 : i32
    %116 = arith.addi %115, %c1_i32_71 : i32
    %117 = arith.index_cast %116 : i32 to index
    %118 = memref.load %arg2[%117] : memref<36xf32, #tpu.memory_space<smem>>
    %c1_72 = arith.constant 1 : index
    %c0_73 = arith.constant 0 : index
    %c1_74 = arith.constant 1 : index
    %119 = vector.load %arg6[%c1_72, %c0_73, %c1_74] : memref<4x18x18xf32, #tpu.memory_space<vmem>>, vector<1x16x16xf32>
    %120 = vector.shape_cast %119 : vector<1x16x16xf32> to vector<16x16xf32>
    %121 = vector.broadcast %118 : f32 to vector<16x16xf32>
    %122 = arith.mulf %121, %120 : vector<16x16xf32>
    %123 = arith.addf %114, %122 : vector<16x16xf32>
    %c0_i32_75 = arith.constant 0 : i32
    %124 = arith.addi %102, %c0_i32_75 : i32
    %c2_i32_76 = arith.constant 2 : i32
    %125 = arith.addi %124, %c2_i32_76 : i32
    %126 = arith.index_cast %125 : i32 to index
    %127 = memref.load %arg2[%126] : memref<36xf32, #tpu.memory_space<smem>>
    %c1_77 = arith.constant 1 : index
    %c0_78 = arith.constant 0 : index
    %c2_79 = arith.constant 2 : index
    %128 = vector.load %arg6[%c1_77, %c0_78, %c2_79] : memref<4x18x18xf32, #tpu.memory_space<vmem>>, vector<1x16x16xf32>
    %129 = vector.shape_cast %128 : vector<1x16x16xf32> to vector<16x16xf32>
    %130 = vector.broadcast %127 : f32 to vector<16x16xf32>
    %131 = arith.mulf %130, %129 : vector<16x16xf32>
    %132 = arith.addf %123, %131 : vector<16x16xf32>
    %c3_i32_80 = arith.constant 3 : i32
    %133 = arith.addi %102, %c3_i32_80 : i32
    %c0_i32_81 = arith.constant 0 : i32
    %134 = arith.addi %133, %c0_i32_81 : i32
    %135 = arith.index_cast %134 : i32 to index
    %136 = memref.load %arg2[%135] : memref<36xf32, #tpu.memory_space<smem>>
    %c1_82 = arith.constant 1 : index
    %c1_83 = arith.constant 1 : index
    %c0_84 = arith.constant 0 : index
    %137 = vector.load %arg6[%c1_82, %c1_83, %c0_84] : memref<4x18x18xf32, #tpu.memory_space<vmem>>, vector<1x16x16xf32>
    %138 = vector.shape_cast %137 : vector<1x16x16xf32> to vector<16x16xf32>
    %139 = vector.broadcast %136 : f32 to vector<16x16xf32>
    %140 = arith.mulf %139, %138 : vector<16x16xf32>
    %141 = arith.addf %132, %140 : vector<16x16xf32>
    %c3_i32_85 = arith.constant 3 : i32
    %142 = arith.addi %102, %c3_i32_85 : i32
    %c1_i32_86 = arith.constant 1 : i32
    %143 = arith.addi %142, %c1_i32_86 : i32
    %144 = arith.index_cast %143 : i32 to index
    %145 = memref.load %arg2[%144] : memref<36xf32, #tpu.memory_space<smem>>
    %c1_87 = arith.constant 1 : index
    %c1_88 = arith.constant 1 : index
    %c1_89 = arith.constant 1 : index
    %146 = vector.load %arg6[%c1_87, %c1_88, %c1_89] : memref<4x18x18xf32, #tpu.memory_space<vmem>>, vector<1x16x16xf32>
    %147 = vector.shape_cast %146 : vector<1x16x16xf32> to vector<16x16xf32>
    %148 = vector.broadcast %145 : f32 to vector<16x16xf32>
    %149 = arith.mulf %148, %147 : vector<16x16xf32>
    %150 = arith.addf %141, %149 : vector<16x16xf32>
    %c3_i32_90 = arith.constant 3 : i32
    %151 = arith.addi %102, %c3_i32_90 : i32
    %c2_i32_91 = arith.constant 2 : i32
    %152 = arith.addi %151, %c2_i32_91 : i32
    %153 = arith.index_cast %152 : i32 to index
    %154 = memref.load %arg2[%153] : memref<36xf32, #tpu.memory_space<smem>>
    %c1_92 = arith.constant 1 : index
    %c1_93 = arith.constant 1 : index
    %c2_94 = arith.constant 2 : index
    %155 = vector.load %arg6[%c1_92, %c1_93, %c2_94] : memref<4x18x18xf32, #tpu.memory_space<vmem>>, vector<1x16x16xf32>
    %156 = vector.shape_cast %155 : vector<1x16x16xf32> to vector<16x16xf32>
    %157 = vector.broadcast %154 : f32 to vector<16x16xf32>
    %158 = arith.mulf %157, %156 : vector<16x16xf32>
    %159 = arith.addf %150, %158 : vector<16x16xf32>
    %c6_i32_95 = arith.constant 6 : i32
    %160 = arith.addi %102, %c6_i32_95 : i32
    %c0_i32_96 = arith.constant 0 : i32
    %161 = arith.addi %160, %c0_i32_96 : i32
    %162 = arith.index_cast %161 : i32 to index
    %163 = memref.load %arg2[%162] : memref<36xf32, #tpu.memory_space<smem>>
    %c1_97 = arith.constant 1 : index
    %c2_98 = arith.constant 2 : index
    %c0_99 = arith.constant 0 : index
    %164 = vector.load %arg6[%c1_97, %c2_98, %c0_99] : memref<4x18x18xf32, #tpu.memory_space<vmem>>, vector<1x16x16xf32>
    %165 = vector.shape_cast %164 : vector<1x16x16xf32> to vector<16x16xf32>
    %166 = vector.broadcast %163 : f32 to vector<16x16xf32>
    %167 = arith.mulf %166, %165 : vector<16x16xf32>
    %168 = arith.addf %159, %167 : vector<16x16xf32>
    %c6_i32_100 = arith.constant 6 : i32
    %169 = arith.addi %102, %c6_i32_100 : i32
    %c1_i32_101 = arith.constant 1 : i32
    %170 = arith.addi %169, %c1_i32_101 : i32
    %171 = arith.index_cast %170 : i32 to index
    %172 = memref.load %arg2[%171] : memref<36xf32, #tpu.memory_space<smem>>
    %c1_102 = arith.constant 1 : index
    %c2_103 = arith.constant 2 : index
    %c1_104 = arith.constant 1 : index
    %173 = vector.load %arg6[%c1_102, %c2_103, %c1_104] : memref<4x18x18xf32, #tpu.memory_space<vmem>>, vector<1x16x16xf32>
    %174 = vector.shape_cast %173 : vector<1x16x16xf32> to vector<16x16xf32>
    %175 = vector.broadcast %172 : f32 to vector<16x16xf32>
    %176 = arith.mulf %175, %174 : vector<16x16xf32>
    %177 = arith.addf %168, %176 : vector<16x16xf32>
    %c6_i32_105 = arith.constant 6 : i32
    %178 = arith.addi %102, %c6_i32_105 : i32
    %c2_i32_106 = arith.constant 2 : i32
    %179 = arith.addi %178, %c2_i32_106 : i32
    %180 = arith.index_cast %179 : i32 to index
    %181 = memref.load %arg2[%180] : memref<36xf32, #tpu.memory_space<smem>>
    %c1_107 = arith.constant 1 : index
    %c2_108 = arith.constant 2 : index
    %c2_109 = arith.constant 2 : index
    %182 = vector.load %arg6[%c1_107, %c2_108, %c2_109] : memref<4x18x18xf32, #tpu.memory_space<vmem>>, vector<1x16x16xf32>
    %183 = vector.shape_cast %182 : vector<1x16x16xf32> to vector<16x16xf32>
    %184 = vector.broadcast %181 : f32 to vector<16x16xf32>
    %185 = arith.mulf %184, %183 : vector<16x16xf32>
    %186 = arith.addf %177, %185 : vector<16x16xf32>
    %c0_110 = arith.constant 0 : index
    %c1_111 = arith.constant 1 : index
    %c0_112 = arith.constant 0 : index
    %c0_113 = arith.constant 0 : index
    %187 = vector.load %arg5[%c0_110, %c1_111, %c0_112, %c0_113] : memref<1x4x16x16xf32, #tpu.memory_space<vmem>>, vector<1x1x16x16xf32>
    %188 = vector.shape_cast %187 : vector<1x1x16x16xf32> to vector<16x16xf32>
    %189 = vector.shape_cast %186 : vector<16x16xf32> to vector<1x1x16x16xf32>
    tpu.vector_store %arg5[%c0_110, %c1_111, %c0_112, %c0_113], %189 {strides = array<i32>} : memref<1x4x16x16xf32, #tpu.memory_space<vmem>>, vector<1x1x16x16xf32>,
    %c2_i32_114 = arith.constant 2 : i32
    %190 = arith.addi %11, %c2_i32_114 : i32
    %c9_i32_115 = arith.constant 9 : i32
    %191 = arith.muli %190, %c9_i32_115 : i32
    %192 = arith.index_cast %190 : i32 to index
    %193 = memref.load %arg3[%192] : memref<4xf32, #tpu.memory_space<smem>>
    %194 = vector.broadcast %193 : f32 to vector<16x16xf32>
    %c0_i32_116 = arith.constant 0 : i32
    %195 = arith.addi %191, %c0_i32_116 : i32
    %c0_i32_117 = arith.constant 0 : i32
    %196 = arith.addi %195, %c0_i32_117 : i32
    %197 = arith.index_cast %196 : i32 to index
    %198 = memref.load %arg2[%197] : memref<36xf32, #tpu.memory_space<smem>>
    %c2_118 = arith.constant 2 : index
    %c0_119 = arith.constant 0 : index
    %c0_120 = arith.constant 0 : index
    %199 = vector.load %arg6[%c2_118, %c0_119, %c0_120] : memref<4x18x18xf32, #tpu.memory_space<vmem>>, vector<1x16x16xf32>
    %200 = vector.shape_cast %199 : vector<1x16x16xf32> to vector<16x16xf32>
    %201 = vector.broadcast %198 : f32 to vector<16x16xf32>
    %202 = arith.mulf %201, %200 : vector<16x16xf32>
    %203 = arith.addf %194, %202 : vector<16x16xf32>
    %c0_i32_121 = arith.constant 0 : i32
    %204 = arith.addi %191, %c0_i32_121 : i32
    %c1_i32_122 = arith.constant 1 : i32
    %205 = arith.addi %204, %c1_i32_122 : i32
    %206 = arith.index_cast %205 : i32 to index
    %207 = memref.load %arg2[%206] : memref<36xf32, #tpu.memory_space<smem>>
    %c2_123 = arith.constant 2 : index
    %c0_124 = arith.constant 0 : index
    %c1_125 = arith.constant 1 : index
    %208 = vector.load %arg6[%c2_123, %c0_124, %c1_125] : memref<4x18x18xf32, #tpu.memory_space<vmem>>, vector<1x16x16xf32>
    %209 = vector.shape_cast %208 : vector<1x16x16xf32> to vector<16x16xf32>
    %210 = vector.broadcast %207 : f32 to vector<16x16xf32>
    %211 = arith.mulf %210, %209 : vector<16x16xf32>
    %212 = arith.addf %203, %211 : vector<16x16xf32>
    %c0_i32_126 = arith.constant 0 : i32
    %213 = arith.addi %191, %c0_i32_126 : i32
    %c2_i32_127 = arith.constant 2 : i32
    %214 = arith.addi %213, %c2_i32_127 : i32
    %215 = arith.index_cast %214 : i32 to index
    %216 = memref.load %arg2[%215] : memref<36xf32, #tpu.memory_space<smem>>
    %c2_128 = arith.constant 2 : index
    %c0_129 = arith.constant 0 : index
    %c2_130 = arith.constant 2 : index
    %217 = vector.load %arg6[%c2_128, %c0_129, %c2_130] : memref<4x18x18xf32, #tpu.memory_space<vmem>>, vector<1x16x16xf32>
    %218 = vector.shape_cast %217 : vector<1x16x16xf32> to vector<16x16xf32>
    %219 = vector.broadcast %216 : f32 to vector<16x16xf32>
    %220 = arith.mulf %219, %218 : vector<16x16xf32>
    %221 = arith.addf %212, %220 : vector<16x16xf32>
    %c3_i32_131 = arith.constant 3 : i32
    %222 = arith.addi %191, %c3_i32_131 : i32
    %c0_i32_132 = arith.constant 0 : i32
    %223 = arith.addi %222, %c0_i32_132 : i32
    %224 = arith.index_cast %223 : i32 to index
    %225 = memref.load %arg2[%224] : memref<36xf32, #tpu.memory_space<smem>>
    %c2_133 = arith.constant 2 : index
    %c1_134 = arith.constant 1 : index
    %c0_135 = arith.constant 0 : index
    %226 = vector.load %arg6[%c2_133, %c1_134, %c0_135] : memref<4x18x18xf32, #tpu.memory_space<vmem>>, vector<1x16x16xf32>
    %227 = vector.shape_cast %226 : vector<1x16x16xf32> to vector<16x16xf32>
    %228 = vector.broadcast %225 : f32 to vector<16x16xf32>
    %229 = arith.mulf %228, %227 : vector<16x16xf32>
    %230 = arith.addf %221, %229 : vector<16x16xf32>
    %c3_i32_136 = arith.constant 3 : i32
    %231 = arith.addi %191, %c3_i32_136 : i32
    %c1_i32_137 = arith.constant 1 : i32
    %232 = arith.addi %231, %c1_i32_137 : i32
    %233 = arith.index_cast %232 : i32 to index
    %234 = memref.load %arg2[%233] : memref<36xf32, #tpu.memory_space<smem>>
    %c2_138 = arith.constant 2 : index
    %c1_139 = arith.constant 1 : index
    %c1_140 = arith.constant 1 : index
    %235 = vector.load %arg6[%c2_138, %c1_139, %c1_140] : memref<4x18x18xf32, #tpu.memory_space<vmem>>, vector<1x16x16xf32>
    %236 = vector.shape_cast %235 : vector<1x16x16xf32> to vector<16x16xf32>
    %237 = vector.broadcast %234 : f32 to vector<16x16xf32>
    %238 = arith.mulf %237, %236 : vector<16x16xf32>
    %239 = arith.addf %230, %238 : vector<16x16xf32>
    %c3_i32_141 = arith.constant 3 : i32
    %240 = arith.addi %191, %c3_i32_141 : i32
    %c2_i32_142 = arith.constant 2 : i32
    %241 = arith.addi %240, %c2_i32_142 : i32
    %242 = arith.index_cast %241 : i32 to index
    %243 = memref.load %arg2[%242] : memref<36xf32, #tpu.memory_space<smem>>
    %c2_143 = arith.constant 2 : index
    %c1_144 = arith.constant 1 : index
    %c2_145 = arith.constant 2 : index
    %244 = vector.load %arg6[%c2_143, %c1_144, %c2_145] : memref<4x18x18xf32, #tpu.memory_space<vmem>>, vector<1x16x16xf32>
    %245 = vector.shape_cast %244 : vector<1x16x16xf32> to vector<16x16xf32>
    %246 = vector.broadcast %243 : f32 to vector<16x16xf32>
    %247 = arith.mulf %246, %245 : vector<16x16xf32>
    %248 = arith.addf %239, %247 : vector<16x16xf32>
    %c6_i32_146 = arith.constant 6 : i32
    %249 = arith.addi %191, %c6_i32_146 : i32
    %c0_i32_147 = arith.constant 0 : i32
    %250 = arith.addi %249, %c0_i32_147 : i32
    %251 = arith.index_cast %250 : i32 to index
    %252 = memref.load %arg2[%251] : memref<36xf32, #tpu.memory_space<smem>>
    %c2_148 = arith.constant 2 : index
    %c2_149 = arith.constant 2 : index
    %c0_150 = arith.constant 0 : index
    %253 = vector.load %arg6[%c2_148, %c2_149, %c0_150] : memref<4x18x18xf32, #tpu.memory_space<vmem>>, vector<1x16x16xf32>
    %254 = vector.shape_cast %253 : vector<1x16x16xf32> to vector<16x16xf32>
    %255 = vector.broadcast %252 : f32 to vector<16x16xf32>
    %256 = arith.mulf %255, %254 : vector<16x16xf32>
    %257 = arith.addf %248, %256 : vector<16x16xf32>
    %c6_i32_151 = arith.constant 6 : i32
    %258 = arith.addi %191, %c6_i32_151 : i32
    %c1_i32_152 = arith.constant 1 : i32
    %259 = arith.addi %258, %c1_i32_152 : i32
    %260 = arith.index_cast %259 : i32 to index
    %261 = memref.load %arg2[%260] : memref<36xf32, #tpu.memory_space<smem>>
    %c2_153 = arith.constant 2 : index
    %c2_154 = arith.constant 2 : index
    %c1_155 = arith.constant 1 : index
    %262 = vector.load %arg6[%c2_153, %c2_154, %c1_155] : memref<4x18x18xf32, #tpu.memory_space<vmem>>, vector<1x16x16xf32>
    %263 = vector.shape_cast %262 : vector<1x16x16xf32> to vector<16x16xf32>
    %264 = vector.broadcast %261 : f32 to vector<16x16xf32>
    %265 = arith.mulf %264, %263 : vector<16x16xf32>
    %266 = arith.addf %257, %265 : vector<16x16xf32>
    %c6_i32_156 = arith.constant 6 : i32
    %267 = arith.addi %191, %c6_i32_156 : i32
    %c2_i32_157 = arith.constant 2 : i32
    %268 = arith.addi %267, %c2_i32_157 : i32
    %269 = arith.index_cast %268 : i32 to index
    %270 = memref.load %arg2[%269] : memref<36xf32, #tpu.memory_space<smem>>
    %c2_158 = arith.constant 2 : index
    %c2_159 = arith.constant 2 : index
    %c2_160 = arith.constant 2 : index
    %271 = vector.load %arg6[%c2_158, %c2_159, %c2_160] : memref<4x18x18xf32, #tpu.memory_space<vmem>>, vector<1x16x16xf32>
    %272 = vector.shape_cast %271 : vector<1x16x16xf32> to vector<16x16xf32>
    %273 = vector.broadcast %270 : f32 to vector<16x16xf32>
    %274 = arith.mulf %273, %272 : vector<16x16xf32>
    %275 = arith.addf %266, %274 : vector<16x16xf32>
    %c0_161 = arith.constant 0 : index
    %c2_162 = arith.constant 2 : index
    %c0_163 = arith.constant 0 : index
    %c0_164 = arith.constant 0 : index
    %276 = vector.load %arg5[%c0_161, %c2_162, %c0_163, %c0_164] : memref<1x4x16x16xf32, #tpu.memory_space<vmem>>, vector<1x1x16x16xf32>
    %277 = vector.shape_cast %276 : vector<1x1x16x16xf32> to vector<16x16xf32>
    %278 = vector.shape_cast %275 : vector<16x16xf32> to vector<1x1x16x16xf32>
    tpu.vector_store %arg5[%c0_161, %c2_162, %c0_163, %c0_164], %278 {strides = array<i32>} : memref<1x4x16x16xf32, #tpu.memory_space<vmem>>, vector<1x1x16x16xf32>,
    %c3_i32_165 = arith.constant 3 : i32
    %279 = arith.addi %11, %c3_i32_165 : i32
    %c9_i32_166 = arith.constant 9 : i32
    %280 = arith.muli %279, %c9_i32_166 : i32
    %281 = arith.index_cast %279 : i32 to index
    %282 = memref.load %arg3[%281] : memref<4xf32, #tpu.memory_space<smem>>
    %283 = vector.broadcast %282 : f32 to vector<16x16xf32>
    %c0_i32_167 = arith.constant 0 : i32
    %284 = arith.addi %280, %c0_i32_167 : i32
    %c0_i32_168 = arith.constant 0 : i32
    %285 = arith.addi %284, %c0_i32_168 : i32
    %286 = arith.index_cast %285 : i32 to index
    %287 = memref.load %arg2[%286] : memref<36xf32, #tpu.memory_space<smem>>
    %c3 = arith.constant 3 : index
    %c0_169 = arith.constant 0 : index
    %c0_170 = arith.constant 0 : index
    %288 = vector.load %arg6[%c3, %c0_169, %c0_170] : memref<4x18x18xf32, #tpu.memory_space<vmem>>, vector<1x16x16xf32>
    %289 = vector.shape_cast %288 : vector<1x16x16xf32> to vector<16x16xf32>
    %290 = vector.broadcast %287 : f32 to vector<16x16xf32>
    %291 = arith.mulf %290, %289 : vector<16x16xf32>
    %292 = arith.addf %283, %291 : vector<16x16xf32>
    %c0_i32_171 = arith.constant 0 : i32
    %293 = arith.addi %280, %c0_i32_171 : i32
    %c1_i32_172 = arith.constant 1 : i32
    %294 = arith.addi %293, %c1_i32_172 : i32
    %295 = arith.index_cast %294 : i32 to index
    %296 = memref.load %arg2[%295] : memref<36xf32, #tpu.memory_space<smem>>
    %c3_173 = arith.constant 3 : index
    %c0_174 = arith.constant 0 : index
    %c1_175 = arith.constant 1 : index
    %297 = vector.load %arg6[%c3_173, %c0_174, %c1_175] : memref<4x18x18xf32, #tpu.memory_space<vmem>>, vector<1x16x16xf32>
    %298 = vector.shape_cast %297 : vector<1x16x16xf32> to vector<16x16xf32>
    %299 = vector.broadcast %296 : f32 to vector<16x16xf32>
    %300 = arith.mulf %299, %298 : vector<16x16xf32>
    %301 = arith.addf %292, %300 : vector<16x16xf32>
    %c0_i32_176 = arith.constant 0 : i32
    %302 = arith.addi %280, %c0_i32_176 : i32
    %c2_i32_177 = arith.constant 2 : i32
    %303 = arith.addi %302, %c2_i32_177 : i32
    %304 = arith.index_cast %303 : i32 to index
    %305 = memref.load %arg2[%304] : memref<36xf32, #tpu.memory_space<smem>>
    %c3_178 = arith.constant 3 : index
    %c0_179 = arith.constant 0 : index
    %c2_180 = arith.constant 2 : index
    %306 = vector.load %arg6[%c3_178, %c0_179, %c2_180] : memref<4x18x18xf32, #tpu.memory_space<vmem>>, vector<1x16x16xf32>
    %307 = vector.shape_cast %306 : vector<1x16x16xf32> to vector<16x16xf32>
    %308 = vector.broadcast %305 : f32 to vector<16x16xf32>
    %309 = arith.mulf %308, %307 : vector<16x16xf32>
    %310 = arith.addf %301, %309 : vector<16x16xf32>
    %c3_i32_181 = arith.constant 3 : i32
    %311 = arith.addi %280, %c3_i32_181 : i32
    %c0_i32_182 = arith.constant 0 : i32
    %312 = arith.addi %311, %c0_i32_182 : i32
    %313 = arith.index_cast %312 : i32 to index
    %314 = memref.load %arg2[%313] : memref<36xf32, #tpu.memory_space<smem>>
    %c3_183 = arith.constant 3 : index
    %c1_184 = arith.constant 1 : index
    %c0_185 = arith.constant 0 : index
    %315 = vector.load %arg6[%c3_183, %c1_184, %c0_185] : memref<4x18x18xf32, #tpu.memory_space<vmem>>, vector<1x16x16xf32>
    %316 = vector.shape_cast %315 : vector<1x16x16xf32> to vector<16x16xf32>
    %317 = vector.broadcast %314 : f32 to vector<16x16xf32>
    %318 = arith.mulf %317, %316 : vector<16x16xf32>
    %319 = arith.addf %310, %318 : vector<16x16xf32>
    %c3_i32_186 = arith.constant 3 : i32
    %320 = arith.addi %280, %c3_i32_186 : i32
    %c1_i32_187 = arith.constant 1 : i32
    %321 = arith.addi %320, %c1_i32_187 : i32
    %322 = arith.index_cast %321 : i32 to index
    %323 = memref.load %arg2[%322] : memref<36xf32, #tpu.memory_space<smem>>
    %c3_188 = arith.constant 3 : index
    %c1_189 = arith.constant 1 : index
    %c1_190 = arith.constant 1 : index
    %324 = vector.load %arg6[%c3_188, %c1_189, %c1_190] : memref<4x18x18xf32, #tpu.memory_space<vmem>>, vector<1x16x16xf32>
    %325 = vector.shape_cast %324 : vector<1x16x16xf32> to vector<16x16xf32>
    %326 = vector.broadcast %323 : f32 to vector<16x16xf32>
    %327 = arith.mulf %326, %325 : vector<16x16xf32>
    %328 = arith.addf %319, %327 : vector<16x16xf32>
    %c3_i32_191 = arith.constant 3 : i32
    %329 = arith.addi %280, %c3_i32_191 : i32
    %c2_i32_192 = arith.constant 2 : i32
    %330 = arith.addi %329, %c2_i32_192 : i32
    %331 = arith.index_cast %330 : i32 to index
    %332 = memref.load %arg2[%331] : memref<36xf32, #tpu.memory_space<smem>>
    %c3_193 = arith.constant 3 : index
    %c1_194 = arith.constant 1 : index
    %c2_195 = arith.constant 2 : index
    %333 = vector.load %arg6[%c3_193, %c1_194, %c2_195] : memref<4x18x18xf32, #tpu.memory_space<vmem>>, vector<1x16x16xf32>
    %334 = vector.shape_cast %333 : vector<1x16x16xf32> to vector<16x16xf32>
    %335 = vector.broadcast %332 : f32 to vector<16x16xf32>
    %336 = arith.mulf %335, %334 : vector<16x16xf32>
    %337 = arith.addf %328, %336 : vector<16x16xf32>
    %c6_i32_196 = arith.constant 6 : i32
    %338 = arith.addi %280, %c6_i32_196 : i32
    %c0_i32_197 = arith.constant 0 : i32
    %339 = arith.addi %338, %c0_i32_197 : i32
    %340 = arith.index_cast %339 : i32 to index
    %341 = memref.load %arg2[%340] : memref<36xf32, #tpu.memory_space<smem>>
    %c3_198 = arith.constant 3 : index
    %c2_199 = arith.constant 2 : index
    %c0_200 = arith.constant 0 : index
    %342 = vector.load %arg6[%c3_198, %c2_199, %c0_200] : memref<4x18x18xf32, #tpu.memory_space<vmem>>, vector<1x16x16xf32>
    %343 = vector.shape_cast %342 : vector<1x16x16xf32> to vector<16x16xf32>
    %344 = vector.broadcast %341 : f32 to vector<16x16xf32>
    %345 = arith.mulf %344, %343 : vector<16x16xf32>
    %346 = arith.addf %337, %345 : vector<16x16xf32>
    %c6_i32_201 = arith.constant 6 : i32
    %347 = arith.addi %280, %c6_i32_201 : i32
    %c1_i32_202 = arith.constant 1 : i32
    %348 = arith.addi %347, %c1_i32_202 : i32
    %349 = arith.index_cast %348 : i32 to index
    %350 = memref.load %arg2[%349] : memref<36xf32, #tpu.memory_space<smem>>
    %c3_203 = arith.constant 3 : index
    %c2_204 = arith.constant 2 : index
    %c1_205 = arith.constant 1 : index
    %351 = vector.load %arg6[%c3_203, %c2_204, %c1_205] : memref<4x18x18xf32, #tpu.memory_space<vmem>>, vector<1x16x16xf32>
    %352 = vector.shape_cast %351 : vector<1x16x16xf32> to vector<16x16xf32>
    %353 = vector.broadcast %350 : f32 to vector<16x16xf32>
    %354 = arith.mulf %353, %352 : vector<16x16xf32>
    %355 = arith.addf %346, %354 : vector<16x16xf32>
    %c6_i32_206 = arith.constant 6 : i32
    %356 = arith.addi %280, %c6_i32_206 : i32
    %c2_i32_207 = arith.constant 2 : i32
    %357 = arith.addi %356, %c2_i32_207 : i32
    %358 = arith.index_cast %357 : i32 to index
    %359 = memref.load %arg2[%358] : memref<36xf32, #tpu.memory_space<smem>>
    %c3_208 = arith.constant 3 : index
    %c2_209 = arith.constant 2 : index
    %c2_210 = arith.constant 2 : index
    %360 = vector.load %arg6[%c3_208, %c2_209, %c2_210] : memref<4x18x18xf32, #tpu.memory_space<vmem>>, vector<1x16x16xf32>
    %361 = vector.shape_cast %360 : vector<1x16x16xf32> to vector<16x16xf32>
    %362 = vector.broadcast %359 : f32 to vector<16x16xf32>
    %363 = arith.mulf %362, %361 : vector<16x16xf32>
    %364 = arith.addf %355, %363 : vector<16x16xf32>
    %c0_211 = arith.constant 0 : index
    %c3_212 = arith.constant 3 : index
    %c0_213 = arith.constant 0 : index
    %c0_214 = arith.constant 0 : index
    %365 = vector.load %arg5[%c0_211, %c3_212, %c0_213, %c0_214] : memref<1x4x16x16xf32, #tpu.memory_space<vmem>>, vector<1x1x16x16xf32>
    %366 = vector.shape_cast %365 : vector<1x1x16x16xf32> to vector<16x16xf32>
    %367 = vector.shape_cast %364 : vector<16x16xf32> to vector<1x1x16x16xf32>
    tpu.vector_store %arg5[%c0_211, %c3_212, %c0_213, %c0_214], %367 {strides = array<i32>} : memref<1x4x16x16xf32, #tpu.memory_space<vmem>>, vector<1x1x16x16xf32>,
    return
  }
  func.func @transform_0(%arg0: i32, %arg1: i32) -> i32 {
    %c0_i32 = arith.constant 0 : i32
    %c0_i32_0 = arith.constant 0 : i32
    return %c0_i32 : i32
  }
  func.func @transform_1(%arg0: i32, %arg1: i32) -> i32 {
    %c0_i32 = arith.constant 0 : i32
    %c0_i32_0 = arith.constant 0 : i32
    return %c0_i32 : i32
  }
  func.func @transform_2(%arg0: i32, %arg1: i32) -> (i32, i32, i32, i32) {
    %c0_i32 = arith.constant 0 : i32
    %c0_i32_0 = arith.constant 0 : i32
    %c0_i32_1 = arith.constant 0 : i32
    return %arg1, %arg0, %c0_i32, %c0_i32_0 : i32, i32, i32, i32
  }
  func.func @transform_3(%arg0: i32, %arg1: i32) -> (i32, i32, i32, i32) {
    %c0_i32 = arith.constant 0 : i32
    %c0_i32_0 = arith.constant 0 : i32
    %c0_i32_1 = arith.constant 0 : i32
    return %arg1, %arg0, %c0_i32, %c0_i32_0 : i32, i32, i32, i32
  }
}

</mosaic_0001>

<bundles_post_ra>
// kernel: tpu_custom_call.1
= control target key start
LH: loop header
LB: loop body
LE: loop exit
PB: predicated region body
PF: predicated region fallthrough
CT: control target
= control target key end

     0   :  { %8 = vsyncpa [#allocation6], 0  ;;  %s1808_s0 = inlined_call_operand.hbm [shape: f32[36], index: 0, kind: input, shape index: {}]   ;;  %s1809_s1 = inlined_call_operand.vmem [shape: f32[4], index: 1, kind: input, shape index: {}]   ;;  %s1810_s2 = inlined_call_operand.hbm [shape: f32[2,4,16,16], index: 2, kind: input, shape index: {}]   ;;  %s1811_s3 = inlined_call_operand.hbm [shape: f32[2,4,16,16], index: 3, kind: output, shape index: {}]  }
   0x1   :  { %9 = vsyncpa [#allocation7], 0 }
   0x2   :  { %10 = vsyncpa [#allocation4], 0 }
   0x3   :  { %12 = vsyncpa [#allocation4 + $0x1], 0 }
   0x4   :  { %13 = vsyncpa [#allocation5], 0 }
   0x5   :  { %15 = vsyncpa [#allocation5 + $0x1], 0  ;;  %s1282_s12 = smov 0   ;;  %s1284_s13 = smov 0  }
   0x6   :  { %s1286_s14 = smov 0   ;;  %s1288_s15 = smov 0  }
   0x7   :  { %s1290_s16 = smov 0   ;;  %s1292_s17 = smov 0  }
   0x8 LB: > { %s944_s18 = sadd.s32 4294967295, %s1248_s17   ;;  %s945_s19 = sadd.s32 4294967294, %s1248_s17   ;;  %s1248_s17 = sphi %s1292_s17, %s21_s17   ;;  %s1244_s16 = sphi %s1290_s16, %s1832_s16   ;;  %s1240_s15 = sphi %s1288_s15, %s1831_s15   ;;  %s1236_s14 = sphi %s1286_s14, %s1830_s14   ;;  %s1232_s13 = sphi %s1284_s13, %s1829_s13   ;;  %s1228_s12 = sphi %s1282_s12, %s1828_s12  }
   0x9   : > { %s84_s20 = sadd.s32 1, %s1236_s14  ;;  %p91_p0 = scmp.ne.s32.totalorder %s1236_s14, %s1232_s13 }
   0xa   : > { %p92_p1 = scmp.eq.s32.totalorder %s1248_s17, 0  ;;  %p97_p2 = scmp.ne.s32.totalorder %s1232_s13, %s1228_s12 }
   0xb   : > { %p1320_p3 = scmp.eq.s32.totalorder %s944_s18, 0  ;;  %p123_p4 = scmp.eq.s32.totalorder %s944_s18, 1 }
   0xc   : > { %p93_p5 = por %p92_p1, %p91_p0  ;;  %p129_p6 = scmp.eq.s32.totalorder %s945_s19, 1 }
   0xd   : > { %s1816_s21 = scalar_select %p1320_p3, 1, 0 }
   0xe   : > { %p1326_p7 = por %p1320_p3, %p97_p2  ;;  %p1330_p8 = por %p123_p4, %p91_p0 }
   0xf   : > { %p1334_p9 = por %p129_p6, %p97_p2  ;;  %p946_p10 = scmp.ge.s32.totalorder %s1248_s17, 1 }
  0x10   : > { %s1817_s22 = scalar_select %p1326_p7, 1, 0 }
  0x11   : > { %s1818_s23 = scalar_select %p1330_p8, 1, 0 }
  0x12   : > { %s1819_s24 = scalar_select %p1334_p9, 1, 0 }
  0x13   : > { %p136_p11 = scmp.lt.s32.totalorder %s1248_s17, 3  ;;  %p1038_p1 = scmp.lt.s32.totalorder %s1248_s17, 2 }
  0x14   : > { %s158_s28 = sshll.u32 %s1809_s1, 4  ;;  %s169_s4 = sand.u32 1, %s1236_s14   ;;  %s159_s28 = int_to_ptr.vmem [resolvable:$true] %s158_s28 }
  0x15   : > { %p1341_p13 = pnand %p946_p10, %p136_p11  ;;  %p1351_p4 = pnand %p1038_p1, %p93_p5 }
  0x16   : > { %s30_s5 = sadd.s32 1, %s1244_s16  ;;  %s1100_s8 = scalar_lea.hbm %s1808_s0, 16 }
  0x17   : > { %p1021_p0 = pneg %p1341_p13  ;;  %p1101_p5 = scmp.ne.s32.totalorder %s1808_s0, %s1100_s8 }
  0x18   : > { %p1107_p1 = scmp.lt.u32.totalorder %s1100_s8, %s1808_s0 }
  0x19   : > { %p1357_p2 = pnand %p1021_p0, %p1320_p3 }
  0x1b   : > { %p1102_p6 = pneg %p1357_p2 }
  0x1d   : > { %p1103_p10 = pnand %p1102_p6, %p1101_p5 }
  0x1f   : > { %p1104_p11 = pneg %p1103_p10 }
  0x21   : > { %p1109_p0 = pnand %p1107_p1, %p1104_p11 }
  0x23   : > { %1112 = shalt.err (!%p1109_p0)
}
  0x24   : > { %s1250_s19 = smov [#allocation3]   ;;  %s1113_s6 = scalar_lea.vmem %s159_s28, 16 }
  0x25   : > { %1024 = dma.hbm_to_smem (!%p1357_p2), %s1808_s0, 16, %s1250_s19, [#allocation6]  }
  0x26   : > { %p1114_p12 = scmp.ne.s32.totalorder %s159_s28, %s1113_s6  ;;  %p1121_p7 = scmp.lt.s32.totalorder %s159_s28, %s159_s28 }
  0x27   : > { %p1122_p5 = scmp.lt.s32.totalorder %s1113_s6, %s1113_s6 }
  0x28   : > { %p1116_p9 = pnand %p1114_p12, %p1102_p6 }
  0x29   : > { %p1123_p10 = por %p1122_p5, %p1121_p7 }
  0x2a   : > { %p1117_p8 = pneg %p1116_p9 }
  0x2c   : > { %p1124_p3 = pnand %p1123_p10, %p1117_p8 }
  0x2e   : > { %1127 = shalt.err (!%p1124_p3)
}
  0x2f   : > { %s1251_s7 = smov [#allocation8]   ;;  %p31_p11 = scmp.ge.s32.totalorder %s30_s5, 2 }
  0x30   : > { %1027 = dma.vmem_to_smem (!%p1357_p2), %s159_s28, 16, %s1251_s7, [#allocation7]  }
  0x31   : > { %s950_s8 = sshll.u32 %s169_s4, 6  ;;  %s1007_s9 = sshll.u32 %s1244_s16, 10 }
  0x32   : > { %s1834_s5 = smov (%p31_p11, %s30_s5), 0  ;;  %s1389_s30 = scalar_lea.hbm %s1810_s2, %s1007_s9 }
  0x33   : > { %s79_s18 = ssub.s32 %s1244_s16, %s1834_s5  ;;  %s173_s19 = scalar_lea.vmem [#allocation9], %s950_s8 }
  0x34   : > { %s183_s28 = sshll.u32 %s173_s19, 4  ;;  %p82_p3 = scmp.eq.s32.totalorder %s79_s18, 0  ;;  %s1393_s28 = int_to_ptr.vmem [resolvable:$true] %s183_s28 }
  0x35   : > { %s1402_s27 = scalar_lea.sflag [#allocation4], %s169_s4  ;;  %s1128_s6 = scalar_lea.hbm %s1389_s30, 1024 }
  0x36   : > { %s1398_s26 = scalar_select %p82_p3, %s1236_s14, %s84_s20  }
  0x37   : > { %p1129_p7 = scmp.ne.s32.totalorder %s1389_s30, %s1128_s6  ;;  %p1130_p8 = pneg %p1351_p4 }
  0x38   : > { %s1133_s9 = scalar_lea.hbm %s1810_s2, 2048  ;;  %p1134_p2 = scmp.lt.u32.totalorder %s1389_s30, %s1810_s2 }
  0x39   : > { %p1131_p9 = pnand %p1130_p8, %p1129_p7  ;;  %p1135_p6 = scmp.lt.u32.totalorder %s1133_s9, %s1128_s6 }
  0x3a   : > { %p1137_p0 = scmp.lt.u32.totalorder %s1128_s6, %s1389_s30 }
  0x3b   : > { %p1132_p12 = pneg %p1131_p9  ;;  %p1136_p1 = por %p1135_p6, %p1134_p2 }
  0x3d   : > { %p1138_p5 = por %p1137_p0, %p1136_p1 }
  0x3f   : > { %p1139_p10 = pnand %p1138_p5, %p1132_p12 }
  0x41   : > { %1142 = shalt.err (!%p1139_p10)
}
  0x42   : > { %s1143_s20 = scalar_lea.vmem %s1393_s28, 1024  ;;  %s1252_s4 = smov [#allocation9]  }
  0x43   : > { %p1144_p11 = scmp.ne.s32.totalorder %s1393_s28, %s1143_s20  ;;  %s1148_s18 = sshll.u32 %s1252_s4, 4  ;;  %s1149_s18 = int_to_ptr.vmem [resolvable:$false] %s1148_s18 }
  0x44   : > { %s1150_s19 = scalar_lea.vmem %s1149_s18, 2048  ;;  %p1151_p9 = scmp.lt.s32.totalorder %s1393_s28, %s1149_s18 }
  0x45   : > { %p1146_p3 = pnand %p1144_p11, %p1130_p8  ;;  %p1152_p2 = scmp.lt.s32.totalorder %s1150_s19, %s1143_s20 }
  0x47   : > { %p1147_p7 = pneg %p1146_p3  ;;  %p1153_p6 = por %p1152_p2, %p1151_p9 }
  0x49   : > { %p1154_p1 = pnand %p1153_p6, %p1147_p7 }
  0x4b   : > { %1157 = shalt.err (!%p1154_p1)
}
  0x4c   : > { %s1253_s6 = smov 128   ;;  %s1254_s7 = smov 8  }
  0x4d   : > { %1031 = dma.hbm_to_vmem [thread:$0]  (!%p1351_p4), %s1389_s30, 1024, %s1393_s28, %s1402_s27, %s1253_s6, %s1253_s6, %s1254_s7  }
  0x4e   : > { %195 = sbr.rel (%p1341_p13) target bundleno = 448 (0x1c0), region = 32  ;;  %p1823_p8 = scmp.ne.s32.totalorder (!%p1341_p13), %s1816_s21, 0 }
  0x55   : > { %1211 = dma.done.wait (%p1823_p8), [#allocation6], 16  }
  0x56   : > { %1213 = vsyncadd (%p1823_p8), [#allocation6], 4294967280 }
  0x57   : > { %1215 = dma.done.wait (%p1823_p8), [#allocation7], 16  }
  0x58   : > { %1217 = vsyncadd (%p1823_p8), [#allocation7], 4294967280  ;;  %s1441_s8 = sand.u32 1, %s1232_s13   ;;  %p1824_p13 = scmp.ne.s32.totalorder %s1817_s22, 0 }
  0x59   : > { %s956_s25 = sshll.u32 %s1441_s8, 6  ;;  %s206_s29 = scalar_lea.sflag [#allocation4], %s1441_s8 }
  0x5a   : > { %s1447_s30 = scalar_lea.vmem [#allocation9], %s956_s25 }
  0x5b   : > { %1219 = dma.done.wait (%p1824_p13), %s206_s29, 1024  }
  0x5c   : > { %1221 = vsyncadd (%p1824_p13), %s206_s29, 4294966272 }
  0x5d   : > { %214 = sfence }
  0x5e   : > { %v272_v0 = vld [vmem:[%s1447_s30] sm:$0xff]  ;;  %v274_v1 = vld [vmem:[%s1447_s30 + $0x10] sm:$0xff]  ;;  %vm235_vm0 = vcmask 139264   ;;  %s1255_s21 = smov 1   ;;  %vm244_vm1 = vcmask 7168   ;;  %vm258_vm2 = vcmask 146568  }
  0x5f   : > { %288 = vrot.lane.b32.xlu0 %v272_v0, %s1255_s21  ;;  %292 = vrot.lane.b32.xlu1 %v274_v1, %s1255_s21  ;;  %vm247_vm3 = vcmask 1024   ;;  %v273_v2 = vld [vmem:[%s1447_s30 + $0x8] sm:$0xff]  ;;  %v275_v3 = vld [vmem:[%s1447_s30 + $0x18] sm:$0xff]  ;;  %v1256_v4 = vmov 0.0   ;;  %vm261_vm4 = vcmask 140424   ;;  %vm312_vm5 = vcmask 138248  }
  0x60   : > { %236 = vst.msk [vmem:[#allocation2] sm:$0x1] %vm235_vm0, %v1256_v4  ;;  %237 = vst.msk [vmem:[#allocation2 + $0x18] sm:$0x1] %vm235_vm0, %v1256_v4  ;;  %v277_v5 = vld [vmem:[%s1447_s30 + $0x28] sm:$0xff]  ;;  %v276_v6 = vld [vmem:[%s1447_s30 + $0x20] sm:$0xff] }
  0x61   : > { %246 = vst.msk [vmem:[#allocation2 + $0x8] sm:$0xff] %vm244_vm1, %v1256_v4  ;;  %250 = vst.msk [vmem:[#allocation2 + $0x20] sm:$0xff] %vm244_vm1, %v1256_v4  ;;  %v279_v7 = vld [vmem:[%s1447_s30 + $0x38] sm:$0xff]  ;;  %v278_v8 = vld [vmem:[%s1447_s30 + $0x30] sm:$0xff]  ;;  %s958_s22 = sld [smem:[#allocation3 + $0x1]]  ;;  %s1503_s28 = sld [smem:[#allocation3 + $0x2]] }
  0x62   : > { %238 = vst.msk [vmem:[#allocation2 + $0x30] sm:$0x1] %vm235_vm0, %v1256_v4  ;;  %239 = vst.msk [vmem:[#allocation2 + $0x48] sm:$0x1] %vm235_vm0, %v1256_v4  ;;  %s1507_s27 = sld [smem:[#allocation3 + $0x8]]  ;;  %s1509_s9 = sld [smem:[#allocation3 + $0x4]] }
  0x63   : > { %240 = vst.msk [vmem:[#allocation2 + $0x11] sm:$0x1] %vm235_vm0, %v1256_v4  ;;  %241 = vst.msk [vmem:[#allocation2 + $0x29] sm:$0x1] %vm235_vm0, %v1256_v4  ;;  %290 = vrot.lane.b32.xlu0 %v273_v2, %s1255_s21  ;;  %294 = vrot.lane.b32.xlu1 %v275_v3, %s1255_s21  ;;  %s1517_s10 = sld [smem:[#allocation3 + $0x5]]  ;;  %s1257_s11 = smov 127  }
  0x64   : > { %242 = vst.msk [vmem:[#allocation2 + $0x41] sm:$0x1] %vm235_vm0, %v1256_v4  ;;  %243 = vst.msk [vmem:[#allocation2 + $0x59] sm:$0x1] %vm235_vm0, %v1256_v4  ;;  %s1520_s20 = sld [smem:[#allocation3]]  ;;  %s1529_s4 = sld [smem:[#allocation3 + $0x7]] }
  0x65   : > { %253 = vst.msk [vmem:[#allocation2 + $0x38] sm:$0xff] %vm244_vm1, %v1256_v4  ;;  %256 = vst.msk [vmem:[#allocation2 + $0x50] sm:$0xff] %vm244_vm1, %v1256_v4  ;;  %s1531_s18 = sld [smem:[#allocation3 + $0x6]]  ;;  %s1258_s19 = smov 126   ;;  %vm441_vm6 = vcmask 130048  }
  0x66   : > { %245 = vst.msk [vmem:[#allocation2] sm:$0xff] %vm244_vm1, %v1256_v4  ;;  %249 = vst.msk [vmem:[#allocation2 + $0x18] sm:$0xff] %vm244_vm1, %v1256_v4  ;;  %s1535_s6 = sld [smem:[#allocation8]]  ;;  %s1537_s7 = sld [smem:[#allocation3 + $0x3]] }
  0x67   : > { %260 = vst.msk [vmem:[#allocation2 + $0x8] sm:$0xff] %vm258_vm2, %v1256_v4  ;;  %264 = vst.msk [vmem:[#allocation2 + $0x20] sm:$0xff] %vm258_vm2, %v1256_v4  ;;  %298 = vrot.lane.b32.xlu1 %v277_v5, %s1255_s21  ;;  %296 = vrot.lane.b32.xlu0 %v276_v6, %s1255_s21  ;;  %v335_v13 = vstv %s958_s22  ;;  %v350_v18 = vstv %s1503_s28  ;;  %s968_s29 = sld [smem:[#allocation3 + $0xa]]  ;;  %s980_s30 = sld [smem:[#allocation3 + $0x13]] }
  0x68   : > { %248 = vst.msk [vmem:[#allocation2 + $0x10] sm:$0x3] %vm247_vm3, %v1256_v4  ;;  %251 = vst.msk [vmem:[#allocation2 + $0x28] sm:$0x3] %vm247_vm3, %v1256_v4  ;;  %v428_v25 = vstv %s1507_s27  ;;  %v374_v27 = vstv %s1509_s9  ;;  %s969_s22 = sld [smem:[#allocation3 + $0xb]]  ;;  %s981_s28 = sld [smem:[#allocation3 + $0x14]] }
  0x69   : > { %252 = vst.msk [vmem:[#allocation2 + $0x30] sm:$0xff] %vm244_vm1, %v1256_v4  ;;  %255 = vst.msk [vmem:[#allocation2 + $0x48] sm:$0xff] %vm244_vm1, %v1256_v4  ;;  %v389_v32 = vstv %s1517_s10  ;;  %s993_s27 = sld [smem:[#allocation3 + $0x1d]]  ;;  %s983_s10 = sld [smem:[#allocation3 + $0x16]] }
  0x6a   : > { %254 = vst.msk [vmem:[#allocation2 + $0x40] sm:$0x3] %vm247_vm3, %v1256_v4  ;;  %257 = vst.msk [vmem:[#allocation2 + $0x58] sm:$0x3] %vm247_vm3, %v1256_v4  ;;  %v328_v33 = vstv %s1520_s20  ;;  %v413_v38 = vstv %s1529_s4  ;;  %s971_s9 = sld [smem:[#allocation3 + $0xd]]  ;;  %s995_s4 = sld [smem:[#allocation3 + $0x1f]] }
  0x6b   : > { %267 = vst.msk [vmem:[#allocation2 + $0x38] sm:$0xff] %vm258_vm2, %v1256_v4  ;;  %270 = vst.msk [vmem:[#allocation2 + $0x50] sm:$0xff] %vm258_vm2, %v1256_v4  ;;  %302 = vrot.lane.b32.xlu1 %v279_v7, %s1255_s21  ;;  %300 = vrot.lane.b32.xlu0 %v278_v8, %s1255_s21  ;;  %v406_v39 = vstv %s1531_s18  ;;  %s992_s21 = sld [smem:[#allocation3 + $0x1c]]  ;;  %s966_s20 = sld [smem:[#allocation8 + $0x1]] }
  0x6c   : > { %259 = vst.msk [vmem:[#allocation2] sm:$0xff] %vm258_vm2, %v1256_v4  ;;  %263 = vst.msk [vmem:[#allocation2 + $0x18] sm:$0xff] %vm258_vm2, %v1256_v4  ;;  %v324_v40 = vstv %s1535_s6  ;;  %v367_v41 = vstv %s1537_s7  ;;  %s1705_s6 = scalar_lea.vmem [#allocation10], %s956_s25  ;;  %s991_s18 = sld [smem:[#allocation3 + $0x1b]] }
  0x6d   : > { %262 = vst.msk [vmem:[#allocation2 + $0x10] sm:$0x3] %vm261_vm4, %v1256_v4  ;;  %265 = vst.msk [vmem:[#allocation2 + $0x28] sm:$0x3] %vm261_vm4, %v1256_v4  ;;  %v459_v48 = vstv %s968_s29  ;;  %v583_v55 = vstv %s980_s30  ;;  %s972_s29 = sld [smem:[#allocation3 + $0xe]]  ;;  %s984_s30 = sld [smem:[#allocation3 + $0x17]] }
  0x6e   : > { %266 = vst.msk [vmem:[#allocation2 + $0x30] sm:$0xff] %vm258_vm2, %v1256_v4  ;;  %269 = vst.msk [vmem:[#allocation2 + $0x48] sm:$0xff] %vm258_vm2, %v1256_v4  ;;  %v474_v0 = vstv %s969_s22  ;;  %v598_v3 = vstv %s981_s28  ;;  %s974_s22 = sld [smem:[#allocation3 + $0x10]]  ;;  %s986_s28 = sld [smem:[#allocation3 + $0x19]] }
  0x6f   : > { %268 = vst.msk [vmem:[#allocation2 + $0x40] sm:$0x3] %vm261_vm4, %v1256_v4  ;;  %271 = vst.msk [vmem:[#allocation2 + $0x58] sm:$0x3] %vm261_vm4, %v1256_v4  ;;  %v722_v6 = vstv %s993_s27  ;;  %s998_s27 = sld [smem:[#allocation3 + $0x22]]  ;;  %s970_s7 = sld [smem:[#allocation3 + $0xc]] }
  0x70   : > { %s1717_s25 = sld [smem:[#allocation3 + $0x1e]]  ;;  %p1825_p12 = scmp.ne.s32.totalorder %s1818_s23, 0 }
  0x71   : > { %v707_v60 = vstv %s992_s21  ;;  %s996_s21 = sld [smem:[#allocation3 + $0x20]] }
  0xd1   : > { %v289_v9 = vpop.permute.xlu0 %288  ;;  %v293_v10 = vpop.permute.xlu1 %292 }
  0xd2   : > { %313 = vst.msk [vmem:[#allocation2 + $0x1] sm:$0xff] %vm312_vm5, %v289_v9  ;;  %315 = vst.msk [vmem:[#allocation2 + $0x19] sm:$0xff] %vm312_vm5, %v293_v10  ;;  %v498_v10 = vstv %s971_s9  ;;  %s975_s9 = sld [smem:[#allocation3 + $0x11]] }
  0xd5   : > { %v291_v11 = vpop.permute.xlu0 %290  ;;  %v295_v12 = vpop.permute.xlu1 %294 }
  0xd6   : > { %314 = vst.msk [vmem:[#allocation2 + $0x9] sm:$0xff] %vm312_vm5, %v291_v11  ;;  %316 = vst.msk [vmem:[#allocation2 + $0x21] sm:$0xff] %vm312_vm5, %v295_v12 }
  0xd9   : > { %v1511_v14 = vld [vmem:[#allocation2] sm:$0xff]  ;;  %v299_v15 = vpop.permute.xlu1 %298  ;;  %v297_v16 = vpop.permute.xlu0 %296  ;;  %v1572_v47 = vld [vmem:[#allocation2 + $0x18] sm:$0xff] }
  0xda   : > { %v336_v17 = vmul.f32 %v335_v13, %v1511_v14  ;;  %318 = vst.msk [vmem:[#allocation2 + $0x39] sm:$0xff] %vm312_vm5, %v299_v15  ;;  %317 = vst.msk [vmem:[#allocation2 + $0x31] sm:$0xff] %vm312_vm5, %v297_v16  ;;  %v351_v23 = vmul.f32 %v350_v18, %v1511_v14  ;;  %v1526_v26 = vld [vmem:[#allocation2 + $0x1] sm:$0xff]  ;;  %v460_v52 = vmul.f32 %v459_v48, %v1572_v47  ;;  %v1609_v9 = vld [vmem:[#allocation2 + $0x19] sm:$0xff]  ;;  %v622_v16 = vstv %s983_s10  ;;  %s987_s10 = sld [smem:[#allocation3 + $0x1a]] }
  0xdb   : > { %v375_v30 = vmul.f32 %v374_v27, %v1526_v26  ;;  %v390_v36 = vmul.f32 %v389_v32, %v1526_v26  ;;  %v475_v1 = vmul.f32 %v474_v0, %v1572_v47  ;;  %v499_v12 = vmul.f32 %v498_v10, %v1609_v9 }
  0xdc   : > { %340 = vrot.lane.b32.xlu0 %v336_v17, %s1257_s11 }
  0xdd   : > { %v327_v19 = vld [vmem:[#allocation2 + $0x8] sm:$0xff]  ;;  %v303_v20 = vpop.permute.xlu1 %302  ;;  %v301_v21 = vpop.permute.xlu0 %300  ;;  %v1574_v49 = vld [vmem:[#allocation2 + $0x20] sm:$0xff] }
  0xde   : > { %v337_v22 = vmul.f32 %v335_v13, %v327_v19  ;;  %v405_v24 = vld [vmem:[#allocation2 + $0xa] sm:$0xff]  ;;  %320 = vst.msk [vmem:[#allocation2 + $0x51] sm:$0xff] %vm312_vm5, %v303_v20  ;;  %319 = vst.msk [vmem:[#allocation2 + $0x49] sm:$0xff] %vm312_vm5, %v301_v21  ;;  %v352_v29 = vmul.f32 %v350_v18, %v327_v19  ;;  %v330_v34 = vmul.f32 %v328_v33, %v327_v19  ;;  %v1549_v37 = vld [vmem:[#allocation2 + $0x2] sm:$0xff]  ;;  %v746_v21 = vstv %s995_s4  ;;  %s999_s4 = sld [smem:[#allocation3 + $0x23]] }
  0xdf   : > { %v1539_v28 = vmul.f32 %v428_v25, %v405_v24  ;;  %v366_v31 = vld [vmem:[#allocation2 + $0x9] sm:$0xff]  ;;  %v414_v45 = vmul.f32 %v413_v38, %v1549_v37  ;;  %v1568_v46 = vmul.f32 %v406_v39, %v405_v24  ;;  %v415_v50 = vmul.f32 %v413_v38, %v405_v24  ;;  %v1611_v11 = vld [vmem:[#allocation2 + $0x21] sm:$0xff] }
  0xe0   : > { %342 = vrot.lane.b32.xlu1 %v337_v22, %s1257_s11  ;;  %355 = vrot.lane.b32.xlu0 %v351_v23, %s1258_s19  ;;  %v376_v35 = vmul.f32 %v374_v27, %v366_v31  ;;  %v1559_v42 = vadd.f32 %v330_v34, %v324_v40  ;;  %v1563_v43 = vmul.f32 %v367_v41, %v366_v31  ;;  %v761_v34 = vstv %s996_s21  ;;  %v1645_v38 = vld [vmem:[#allocation2 + $0x1a] sm:$0xff]  ;;  %s1711_s21 = sld [smem:[#allocation3 + $0x15]] }
  0xe1   : > { %v391_v44 = vmul.f32 %v389_v32, %v366_v31  ;;  %v429_v51 = vmul.f32 %v428_v25, %v1549_v37  ;;  %v461_v53 = vmul.f32 %v459_v48, %v1574_v49  ;;  %v1581_v54 = vld [vmem:[#allocation2 + $0x30] sm:$0xff]  ;;  %v1583_v56 = vld [vmem:[#allocation2 + $0x38] sm:$0xff]  ;;  %v476_v2 = vmul.f32 %v474_v0, %v1574_v49 }
  0xe2   : > { %v584_v57 = vmul.f32 %v583_v55, %v1581_v54  ;;  %v585_v58 = vmul.f32 %v583_v55, %v1583_v56  ;;  %v599_v4 = vmul.f32 %v598_v3, %v1581_v54  ;;  %v600_v5 = vmul.f32 %v598_v3, %v1583_v56  ;;  %v1617_v15 = vld [vmem:[#allocation2 + $0x31] sm:$0xff]  ;;  %v1619_v17 = vld [vmem:[#allocation2 + $0x39] sm:$0xff] }
  0xe3   : > { %v500_v13 = vmul.f32 %v498_v10, %v1611_v11  ;;  %v623_v18 = vmul.f32 %v622_v16, %v1617_v15  ;;  %v624_v19 = vmul.f32 %v622_v16, %v1619_v17  ;;  %v513_v25 = vstv %s972_s29  ;;  %s978_s29 = sld [smem:[#allocation8 + $0x2]] }
  0xe4   : > { %357 = vrot.lane.b32.xlu1 %v352_v29, %s1258_s19  ;;  %379 = vrot.lane.b32.xlu0 %v375_v30, %s1257_s11  ;;  %v514_v27 = vmul.f32 %v513_v25, %v1609_v9  ;;  %v515_v29 = vmul.f32 %v513_v25, %v1611_v11  ;;  %v637_v30 = vstv %s984_s30  ;;  %v676_v3 = vstv %s987_s10  ;;  %s1709_s30 = sld [smem:[#allocation8 + $0x3]]  ;;  %s833_s10 = sshll.u32 %s1705_s6, 4  ;;  %s1757_s10 = int_to_ptr.vmem [resolvable:$true] %s833_s10 }
  0xe5   : > { %v1589_v59 = vld [vmem:[#allocation2 + $0x48] sm:$0xff]  ;;  %v1591_v61 = vld [vmem:[#allocation2 + $0x50] sm:$0xff]  ;;  %v638_v31 = vmul.f32 %v637_v30, %v1617_v15  ;;  %v639_v32 = vmul.f32 %v637_v30, %v1619_v17  ;;  %v329_v10 = vmul.f32 %v328_v33, %v1511_v14 }
  0xe6   : > { %v708_v62 = vmul.f32 %v707_v60, %v1589_v59  ;;  %v709_v63 = vmul.f32 %v707_v60, %v1591_v61  ;;  %v723_v7 = vmul.f32 %v722_v6, %v1589_v59  ;;  %v724_v8 = vmul.f32 %v722_v6, %v1591_v61  ;;  %v1625_v20 = vld [vmem:[#allocation2 + $0x49] sm:$0xff]  ;;  %v1627_v22 = vld [vmem:[#allocation2 + $0x51] sm:$0xff] }
  0xe7   : > { %v747_v23 = vmul.f32 %v746_v21, %v1625_v20  ;;  %v748_v24 = vmul.f32 %v746_v21, %v1627_v22  ;;  %v785_v60 = vstv %s998_s27  ;;  %v800_v6 = vstv %s999_s4  ;;  %s997_s27 = sld [smem:[#allocation3 + $0x21]] }
  0xe8   : > { %381 = vrot.lane.b32.xlu1 %v376_v35, %s1257_s11  ;;  %394 = vrot.lane.b32.xlu0 %v390_v36, %s1258_s19  ;;  %v762_v35 = vmul.f32 %v761_v34, %v1625_v20  ;;  %v763_v36 = vmul.f32 %v761_v34, %v1627_v22 }
  0xec   : > { %396 = vrot.lane.b32.xlu1 %v391_v44, %s1258_s19  ;;  %418 = vrot.lane.b32.xlu0 %v414_v45, %s1257_s11  ;;  %v537_v44 = vstv %s974_s22  ;;  %v1647_v45 = vld [vmem:[#allocation2 + $0x22] sm:$0xff]  ;;  %s973_s22 = sld [smem:[#allocation3 + $0xf]] }
  0xed   : > { %v538_v48 = vmul.f32 %v537_v44, %v1645_v38 }
  0xf0   : > { %420 = vrot.lane.b32.xlu1 %v415_v50, %s1257_s11  ;;  %433 = vrot.lane.b32.xlu0 %v429_v51, %s1258_s19  ;;  %v539_v50 = vmul.f32 %v537_v44, %v1647_v45  ;;  %v1653_v51 = vld [vmem:[#allocation2 + $0x32] sm:$0xff] }
  0xf4   : > { %464 = vrot.lane.b32.xlu1 %v460_v52, %s1257_s11  ;;  %466 = vrot.lane.b32.xlu0 %v461_v53, %s1257_s11  ;;  %v661_v52 = vstv %s986_s28  ;;  %v1655_v53 = vld [vmem:[#allocation2 + $0x3a] sm:$0xff]  ;;  %s985_s28 = sld [smem:[#allocation3 + $0x18]] }
  0xf5   : > { %v662_v55 = vmul.f32 %v661_v52, %v1653_v51 }
  0xf8   : > { %588 = vrot.lane.b32.xlu1 %v584_v57, %s1257_s11  ;;  %590 = vrot.lane.b32.xlu0 %v585_v58, %s1257_s11  ;;  %v663_v57 = vmul.f32 %v661_v52, %v1655_v53  ;;  %v1661_v58 = vld [vmem:[#allocation2 + $0x4a] sm:$0xff] }
  0xfc   : > { %712 = vrot.lane.b32.xlu1 %v708_v62, %s1257_s11  ;;  %714 = vrot.lane.b32.xlu0 %v709_v63, %s1257_s11  ;;  %v1663_v62 = vld [vmem:[#allocation2 + $0x52] sm:$0xff]  ;;  %v786_v63 = vmul.f32 %v785_v60, %v1661_v58 }
  0xfd   : > { %v787_v0 = vmul.f32 %v785_v60, %v1663_v62 }
 0x100   : > { %479 = vrot.lane.b32.xlu1 %v475_v1, %s1258_s19  ;;  %481 = vrot.lane.b32.xlu0 %v476_v2, %s1258_s19  ;;  %v552_v1 = vstv %s975_s9  ;;  %s1008_s9 = sshll.u32 %s1240_s15, 10  ;;  %s817_s15 = scalar_lea.sflag [#allocation5], %s1441_s8 }
 0x101   : > { %v553_v2 = vmul.f32 %v552_v1, %v1645_v38 }
 0x104   : > { %603 = vrot.lane.b32.xlu1 %v599_v4, %s1258_s19  ;;  %605 = vrot.lane.b32.xlu0 %v600_v5, %s1258_s19  ;;  %v554_v4 = vmul.f32 %v552_v1, %v1647_v45  ;;  %v677_v5 = vmul.f32 %v676_v3, %v1653_v51 }
 0x108   : > { %727 = vrot.lane.b32.xlu1 %v723_v7, %s1258_s19  ;;  %729 = vrot.lane.b32.xlu0 %v724_v8, %s1258_s19  ;;  %v678_v7 = vmul.f32 %v676_v3, %v1655_v53  ;;  %v801_v8 = vmul.f32 %v800_v6, %v1661_v58 }
 0x10c   : > { %503 = vrot.lane.b32.xlu1 %v499_v12, %s1257_s11  ;;  %505 = vrot.lane.b32.xlu0 %v500_v13, %s1257_s11  ;;  %v331_v13 = vadd.f32 %v329_v10, %v324_v40  ;;  %v571_v10 = vstv %s978_s29 }
 0x110   : > { %627 = vrot.lane.b32.xlu1 %v623_v18, %s1257_s11  ;;  %629 = vrot.lane.b32.xlu0 %v624_v19, %s1257_s11 }
 0x114   : > { %751 = vrot.lane.b32.xlu1 %v747_v23, %s1257_s11  ;;  %753 = vrot.lane.b32.xlu0 %v748_v24, %s1257_s11  ;;  %v368_v24 = vmul.f32 %v367_v41, %v1526_v26 }
 0x118   : > { %518 = vrot.lane.b32.xlu1 %v514_v27, %s1258_s19  ;;  %520 = vrot.lane.b32.xlu0 %v515_v29, %s1258_s19 }
 0x11c   : > { %642 = vrot.lane.b32.xlu1 %v638_v31, %s1258_s19  ;;  %644 = vrot.lane.b32.xlu0 %v639_v32, %s1258_s19 }
 0x120   : > { %766 = vrot.lane.b32.xlu1 %v762_v35, %s1258_s19  ;;  %768 = vrot.lane.b32.xlu0 %v763_v36, %s1258_s19  ;;  %v407_v35 = vmul.f32 %v406_v39, %v1549_v37 }
 0x124   : > { %542 = vrot.lane.b32.xlu1 %v538_v48, %s1257_s11  ;;  %544 = vrot.lane.b32.xlu0 %v539_v50, %s1257_s11 }
 0x128   : > { %666 = vrot.lane.b32.xlu1 %v662_v55, %s1257_s11  ;;  %668 = vrot.lane.b32.xlu0 %v663_v57, %s1257_s11 }
 0x12c   : > { %790 = vrot.lane.b32.xlu1 %v786_v63, %s1257_s11  ;;  %792 = vrot.lane.b32.xlu0 %v787_v0, %s1257_s11  ;;  %s967_s11 = sld [smem:[#allocation3 + $0x9]]  ;;  %v447_v0 = vstv %s966_s20  ;;  %s1755_s20 = scalar_lea.hbm %s1811_s3, %s1008_s9 }
 0x130   : > { %435 = vrot.lane.b32.xlu1 %v1539_v28, %s1258_s19  ;;  %557 = vrot.lane.b32.xlu0 %v553_v2, %s1258_s19  ;;  %v802_v28 = vmul.f32 %v800_v6, %v1663_v62  ;;  %v700_v2 = vstv %s991_s18  ;;  %s1259_s18 = smov [#allocation10]  }
 0x132   : > { %v452_v55 = vstv %s967_s11 }
 0x133   : > { %v453_v60 = vmul.f32 %v452_v55, %v1572_v47  ;;  %v454_v63 = vmul.f32 %v452_v55, %v1574_v49  ;;  %v615_v49 = vstv %s1711_s21 }
 0x134   : > { %559 = vrot.lane.b32.xlu1 %v554_v4, %s1258_s19  ;;  %681 = vrot.lane.b32.xlu0 %v677_v5, %s1258_s19  ;;  %v491_v5 = vstv %s970_s7  ;;  %s1162_s7 = sshll.u32 %s1259_s18, 4  ;;  %s1163_s7 = int_to_ptr.vmem [resolvable:$false] %s1162_s7 }
 0x135   : > { %v455_v6 = vadd.f32 %v453_v60, %v447_v0  ;;  %s1164_s29 = scalar_lea.vmem %s1163_s7, 2048  ;;  %p1165_p10 = scmp.lt.s32.totalorder %s1757_s10, %s1163_s7 }
 0x138   : > { %683 = vrot.lane.b32.xlu1 %v678_v7, %s1258_s19  ;;  %805 = vrot.lane.b32.xlu0 %v801_v8, %s1258_s19  ;;  %v456_v7 = vadd.f32 %v454_v63, %v447_v0 }
 0x13c   : > { %807 = vrot.lane.b32.xlu1 %v802_v28, %s1258_s19  ;;  %s979_s19 = sld [smem:[#allocation3 + $0x12]] }
 0x142   : > { %v576_v1 = vstv %s979_s19  ;;  %s1158_s19 = scalar_lea.vmem %s1757_s10, 1024 }
 0x143   : > { %v577_v8 = vmul.f32 %v576_v1, %v1581_v54  ;;  %v578_v28 = vmul.f32 %v576_v1, %v1583_v56  ;;  %p1159_p4 = scmp.ne.s32.totalorder %s1757_s10, %s1158_s19  ;;  %p1166_p11 = scmp.lt.s32.totalorder %s1164_s29, %s1158_s19 }
 0x145   : > { %v579_v54 = vadd.f32 %v577_v8, %v571_v10  ;;  %v580_v56 = vadd.f32 %v578_v28, %v571_v10  ;;  %v654_v28 = vstv %s985_s28  ;;  %p1160_p0 = pnand %p1159_p4, %p1825_p12  ;;  %p1167_p3 = por %p1166_p11, %p1165_p10 }
 0x147   : > { %p1161_p5 = pneg %p1160_p0 }
 0x149   : > { %p1168_p7 = pnand %p1167_p3, %p1161_p5 }
 0x14e   : > { %v341_v12 = vpop.permute.xlu0 %340 }
 0x14f   : > { %v346_v16 = vadd.f32 %v341_v12, %v331_v13  ;;  %v695_v13 = vstv %s1709_s30 }
 0x152   : > { %v343_v18 = vpop.permute.xlu1 %342  ;;  %v356_v19 = vpop.permute.xlu0 %355 }
 0x153   : > { %v347_v21 = vadd.f32 %v343_v18, %v1559_v42  ;;  %v361_v23 = vadd.f32 %v356_v19, %v346_v16  ;;  %v701_v16 = vmul.f32 %v700_v2, %v1589_v59  ;;  %v702_v18 = vmul.f32 %v700_v2, %v1591_v61 }
 0x154   : > { %v616_v61 = vmul.f32 %v615_v49, %v1617_v15  ;;  %v530_v2 = vstv %s973_s22 }
 0x155   : > { %v370_v25 = vadd.f32 %v368_v24, %v361_v23  ;;  %v492_v23 = vmul.f32 %v491_v5, %v1609_v9  ;;  %v493_v24 = vmul.f32 %v491_v5, %v1611_v11  ;;  %v617_v9 = vmul.f32 %v615_v49, %v1619_v17 }
 0x156   : > { %v358_v27 = vpop.permute.xlu1 %357  ;;  %v380_v29 = vpop.permute.xlu0 %379  ;;  %v739_v11 = vstv %s1717_s25  ;;  %v532_v8 = vmul.f32 %v530_v2, %v1647_v45 }
 0x157   : > { %v362_v30 = vadd.f32 %v358_v27, %v347_v21  ;;  %v385_v31 = vadd.f32 %v380_v29, %v370_v25  ;;  %v741_v55 = vmul.f32 %v739_v11, %v1627_v22  ;;  %v531_v22 = vmul.f32 %v530_v2, %v1645_v38 }
 0x159   : > { %v371_v14 = vadd.f32 %v1563_v43, %v362_v30 }
 0x15a   : > { %v382_v33 = vpop.permute.xlu1 %381  ;;  %v395_v32 = vpop.permute.xlu0 %394 }
 0x15b   : > { %v386_v40 = vadd.f32 %v382_v33, %v371_v14  ;;  %v400_v34 = vadd.f32 %v395_v32, %v385_v31  ;;  %v703_v33 = vadd.f32 %v701_v16, %v695_v13 }
 0x15d   : > { %v409_v42 = vadd.f32 %v407_v35, %v400_v34 }
 0x15e   : > { %v397_v36 = vpop.permute.xlu1 %396  ;;  %v419_v44 = vpop.permute.xlu0 %418 }
 0x15f   : > { %v401_v48 = vadd.f32 %v397_v36, %v386_v40  ;;  %v424_v26 = vadd.f32 %v419_v44, %v409_v42  ;;  %v704_v40 = vadd.f32 %v702_v18, %v695_v13 }
 0x161   : > { %v1699_v41 = vadd.f32 %v1568_v46, %v401_v48 }
 0x162   : > { %v1701_v50 = vpop.permute.xlu1 %420  ;;  %v434_v43 = vpop.permute.xlu0 %433 }
 0x163   : > { %v439_v52 = vadd.f32 %v434_v43, %v424_v26 }
 0x165   : > { %442 = vst.msk [vmem:[%s1705_s6] sm:$0xff] %vm441_vm6, %v439_v52 }
 0x166   : > { %v465_v37 = vpop.permute.xlu1 %464  ;;  %v467_v39 = vpop.permute.xlu0 %466 }
 0x167   : > { %v470_v47 = vadd.f32 %v465_v37, %v455_v6  ;;  %v471_v12 = vadd.f32 %v467_v39, %v456_v7  ;;  %v740_v39 = vmul.f32 %v739_v11, %v1625_v20 }
 0x16a   : > { %v589_v46 = vpop.permute.xlu1 %588  ;;  %v591_v57 = vpop.permute.xlu0 %590 }
 0x16b   : > { %v594_v29 = vadd.f32 %v589_v46, %v579_v54  ;;  %v595_v30 = vadd.f32 %v591_v57, %v580_v56 }
 0x16e   : > { %v713_v3 = vpop.permute.xlu1 %712  ;;  %v715_v4 = vpop.permute.xlu0 %714 }
 0x16f   : > { %v718_v42 = vadd.f32 %v713_v3, %v703_v33  ;;  %v719_v36 = vadd.f32 %v715_v4, %v704_v40 }
 0x172   : > { %v480_v19 = vpop.permute.xlu1 %479  ;;  %v482_v21 = vpop.permute.xlu0 %481 }
 0x173   : > { %v485_v25 = vadd.f32 %v480_v19, %v470_v47  ;;  %v486_v27 = vadd.f32 %v482_v21, %v471_v12  ;;  %v655_v21 = vmul.f32 %v654_v28, %v1653_v51 }
 0x175   : > { %v494_v31 = vadd.f32 %v492_v23, %v485_v25  ;;  %v495_v14 = vadd.f32 %v493_v24, %v486_v27  ;;  %v656_v23 = vmul.f32 %v654_v28, %v1655_v53  ;;  %v778_v24 = vstv %s997_s27 }
 0x176   : > { %v604_v32 = vpop.permute.xlu1 %603  ;;  %v606_v59 = vpop.permute.xlu0 %605 }
 0x177   : > { %v609_v34 = vadd.f32 %v604_v32, %v594_v29  ;;  %v610_v35 = vadd.f32 %v606_v59, %v595_v30 }
 0x179   : > { %v618_v44 = vadd.f32 %v616_v61, %v609_v34  ;;  %v619_v48 = vadd.f32 %v617_v9, %v610_v35  ;;  %v425_v35 = vadd.f32 %v1701_v50, %v1699_v41 }
 0x17a   : > { %v728_v26 = vpop.permute.xlu1 %727  ;;  %v730_v43 = vpop.permute.xlu0 %729 }
 0x17b   : > { %v733_v52 = vadd.f32 %v728_v26, %v718_v42  ;;  %v734_v37 = vadd.f32 %v730_v43, %v719_v36 }
 0x17d   : > { %v742_v46 = vadd.f32 %v740_v39, %v733_v52  ;;  %v743_v15 = vadd.f32 %v741_v55, %v734_v37 }
 0x17e   : > { %v504_v57 = vpop.permute.xlu1 %503  ;;  %v506_v60 = vpop.permute.xlu0 %505 }
 0x17f   : > { %v509_v3 = vadd.f32 %v504_v57, %v494_v31  ;;  %v510_v4 = vadd.f32 %v506_v60, %v495_v14  ;;  %v779_v31 = vmul.f32 %v778_v24, %v1661_v58  ;;  %v780_v14 = vmul.f32 %v778_v24, %v1663_v62 }
 0x182   : > { %v628_v63 = vpop.permute.xlu1 %627  ;;  %v630_v17 = vpop.permute.xlu0 %629 }
 0x183   : > { %v633_v10 = vadd.f32 %v628_v63, %v618_v44  ;;  %v634_v47 = vadd.f32 %v630_v17, %v619_v48 }
 0x186   : > { %v752_v0 = vpop.permute.xlu1 %751  ;;  %v754_v1 = vpop.permute.xlu0 %753 }
 0x187   : > { %v757_v54 = vadd.f32 %v752_v0, %v742_v46  ;;  %v758_v56 = vadd.f32 %v754_v1, %v743_v15 }
 0x18a   : > { %v519_v5 = vpop.permute.xlu1 %518  ;;  %v521_v6 = vpop.permute.xlu0 %520 }
 0x18b   : > { %v524_v7 = vadd.f32 %v519_v5, %v509_v3  ;;  %v525_v20 = vadd.f32 %v521_v6, %v510_v4 }
 0x18d   : > { %v533_v12 = vadd.f32 %v531_v22, %v524_v7  ;;  %v534_v13 = vadd.f32 %v532_v8, %v525_v20 }
 0x18e   : > { %v643_v49 = vpop.permute.xlu1 %642  ;;  %v645_v16 = vpop.permute.xlu0 %644 }
 0x18f   : > { %v648_v18 = vadd.f32 %v643_v49, %v633_v10  ;;  %v649_v19 = vadd.f32 %v645_v16, %v634_v47 }
 0x191   : > { %v657_v25 = vadd.f32 %v655_v21, %v648_v18  ;;  %v658_v38 = vadd.f32 %v656_v23, %v649_v19 }
 0x192   : > { %v767_v27 = vpop.permute.xlu1 %766  ;;  %v769_v45 = vpop.permute.xlu0 %768 }
 0x193   : > { %v772_v29 = vadd.f32 %v767_v27, %v757_v54  ;;  %v773_v30 = vadd.f32 %v769_v45, %v758_v56 }
 0x195   : > { %v781_v33 = vadd.f32 %v779_v31, %v772_v29  ;;  %v782_v32 = vadd.f32 %v780_v14, %v773_v30 }
 0x196   : > { %v543_v51 = vpop.permute.xlu1 %542  ;;  %v545_v59 = vpop.permute.xlu0 %544 }
 0x197   : > { %v548_v9 = vadd.f32 %v543_v51, %v533_v12  ;;  %v549_v36 = vadd.f32 %v545_v59, %v534_v13 }
 0x19a   : > { %v667_v53 = vpop.permute.xlu1 %666  ;;  %v669_v61 = vpop.permute.xlu0 %668 }
 0x19b   : > { %v672_v44 = vadd.f32 %v667_v53, %v657_v25  ;;  %v673_v43 = vadd.f32 %v669_v61, %v658_v38 }
 0x19e   : > { %v791_v40 = vpop.permute.xlu1 %790  ;;  %v793_v34 = vpop.permute.xlu0 %792 }
 0x19f   : > { %v796_v52 = vadd.f32 %v791_v40, %v781_v33  ;;  %v797_v15 = vadd.f32 %v793_v34, %v782_v32 }
 0x1a2   : > { %v436_v11 = vpop.permute.xlu1 %435  ;;  %v558_v58 = vpop.permute.xlu0 %557 }
 0x1a3   : > { %v440_v42 = vadd.f32 %v436_v11, %v425_v35  ;;  %v563_v62 = vadd.f32 %v558_v58, %v548_v9 }
 0x1a5   : > { %443 = vst.msk [vmem:[%s1705_s6 + $0x8] sm:$0xff] %vm441_vm6, %v440_v42  ;;  %976 = vst.msk [vmem:[%s1705_s6 + $0x10] sm:$0xff] %vm441_vm6, %v563_v62 }
 0x1a6   : > { %v560_v48 = vpop.permute.xlu1 %559  ;;  %v682_v26 = vpop.permute.xlu0 %681 }
 0x1a7   : > { %v564_v41 = vadd.f32 %v560_v48, %v549_v36  ;;  %v687_v50 = vadd.f32 %v682_v26, %v672_v44 }
 0x1a9   : > { %977 = vst.msk [vmem:[%s1705_s6 + $0x18] sm:$0xff] %vm441_vm6, %v564_v41  ;;  %988 = vst.msk [vmem:[%s1705_s6 + $0x20] sm:$0xff] %vm441_vm6, %v687_v50 }
 0x1aa   : > { %v684_v37 = vpop.permute.xlu1 %683  ;;  %v806_v39 = vpop.permute.xlu0 %805 }
 0x1ab   : > { %v688_v55 = vadd.f32 %v684_v37, %v673_v43  ;;  %v811_v46 = vadd.f32 %v806_v39, %v796_v52 }
 0x1ad   : > { %989 = vst.msk [vmem:[%s1705_s6 + $0x28] sm:$0xff] %vm441_vm6, %v688_v55  ;;  %1000 = vst.msk [vmem:[%s1705_s6 + $0x30] sm:$0xff] %vm441_vm6, %v811_v46 }
 0x1ae   : > { %v808_v57 = vpop.permute.xlu1 %807 }
 0x1af   : > { %v812_v60 = vadd.f32 %v808_v57, %v797_v15 }
 0x1b1   : > { %1001 = vst.msk [vmem:[%s1705_s6 + $0x38] sm:$0xff] %vm441_vm6, %v812_v60 }
 0x1b2   : > { %1171 = shalt.err (!%p1168_p7)
}
 0x1b3   : > { %s1172_s6 = scalar_lea.hbm %s1755_s20, 1024  ;;  %s1176_s25 = scalar_lea.hbm %s1811_s3, 2048 }
 0x1b4   : > { %p1173_p9 = scmp.ne.s32.totalorder %s1755_s20, %s1172_s6  ;;  %p1177_p1 = scmp.lt.u32.totalorder %s1755_s20, %s1811_s3 }
 0x1b5   : > { %p1178_p8 = scmp.lt.u32.totalorder %s1176_s25, %s1172_s6  ;;  %p1180_p4 = scmp.lt.u32.totalorder %s1172_s6, %s1755_s20 }
 0x1b6   : > { %p1174_p2 = pnand %p1173_p9, %p1825_p12 }
 0x1b7   : > { %p1179_p13 = por %p1178_p8, %p1177_p1 }
 0x1b8   : > { %p1175_p6 = pneg %p1174_p2 }
 0x1b9   : > { %p1181_p0 = por %p1180_p4, %p1179_p13 }
 0x1bb   : > { %p1182_p5 = pnand %p1181_p0, %p1175_p6 }
 0x1bd   : > { %1185 = shalt.err (!%p1182_p5)
}
 0x1be   : > { %s1260_s27 = smov 128   ;;  %s1261_s9 = smov 8  }
 0x1bf   : > { %1019 = dma.vmem_to_hbm [thread:$0]  (%p1825_p12), %s1757_s10, 1024, %s1755_s20, %s817_s15, %s1260_s27, %s1260_s27, %s1261_s9  }
 0x1c0 PF: > { %s848_s4 = sand.u32 1, %s1228_s12   ;;  %p1826_p10 = scmp.ne.s32.totalorder %s1819_s24, 0 }
 0x1c1   : > { %p1827_p11 = scmp.ge.s32.totalorder %s1248_s17, 2  ;;  %s849_s11 = scalar_lea.sflag [#allocation5], %s848_s4 }
 0x1c3   : > { %p1033_p3 = pnand %p1827_p11, %p1826_p10 }
 0x1c5   : > { %1223 = dma.done.wait (!%p1033_p3), %s849_s11, 1024  }
 0x1c6   : > { %1225 = vsyncadd (!%p1033_p3), %s849_s11, 4294966272  ;;  %s21_s17 = sadd.s32 1, %s1248_s17   ;;  %s1828_s12 = smov %s1232_s13 }
 0x1c7   : > { %p18_p7 = scmp.ge.s32.totalorder %s21_s17, 4   ;;  %s1829_s13 = smov %s1236_s14 }
 0x1c8   : > { %s1830_s14 = smov %s1398_s26  ;;  %s1831_s15 = smov %s1244_s16 }
 0x1c9   : > { %s1832_s16 = smov %s1834_s5  ;;  %20 = sbr.rel (!%p18_p7) target bundleno = 8 (0x8), region = 93 }
 0x1d0   :  { %854 = vsyncpa [#allocation4], 1 }
 0x1d1   :  { %856 = vsyncpa [#allocation4 + $0x1], 1 }
 0x1d2   :  { %857 = vsyncpa [#allocation5], 1 }
 0x1d3   :  { %859 = vsyncpa [#allocation5 + $0x1], 1 }
 0x1d4   :  { %860 = vsyncpa [#allocation6], 1 }
 0x1d5   :  { %862 = vsyncpa [#allocation6 + $0x1], 1 }
 0x1d6   :  { %863 = vsyncpa [#allocation7], 1 }
 0x1d7   :  { %865 = vsyncpa [#allocation7 + $0x1], 1 }

</bundles_post_ra>
